<compile_context>
chip_gen: v5e
topology: v5e:2x2
jax: 0.10.0
libtpu: 0.0.40
codegen_flags: <defaults>
</compile_context>

<pallas_src>
import numpy as np

import jax
import jax.numpy as jnp
from jax import lax
from jax.experimental import pallas as pl
from jax.experimental.pallas import tpu as pltpu


# --------------------------- fixed network dims ----------------------------- #
K = 5                       # conv kernel size
CIN1, COUT1 = 3, 6
CIN2, COUT2 = 6, 16
IH, IW = 32, 32             # input spatial
OH1, OW1 = 14, 14           # conv1 pooled output spatial
OH2, OW2 = 5, 5             # conv2 pooled output spatial
WH1 = IW // 2               # 16 : conv1 input W-phase half width
WH2 = OW1 // 2              # 7  : conv2 input W-phase half width
LANES = 128                 # every output block is padded to 128 lanes
XLANE1 = 2 * WH1 * CIN1     # 96 : conv1 contraction width (pw folded on lanes)
FC1_IN = OH2 * LANES        # 640: fc1 contraction (one 128-lane block per row)


# ------------------------------ fused kernel -------------------------------- #
def lenet_fused_kernel(xp_ref, w1_ref, b1_ref, w2_ref, b2_ref,
                       wf1_ref, bf1_ref, wf2_ref, bf2_ref, wf3_ref, bf3_ref,
                       o_ref):
    """One image per grid step; all weights resident in VMEM.

    xp_ref : (1, 4, 8, 96)   bf16  H-phase-4 split input, lanes = pw*48+m*3+c
    w1_ref : (5, 96, 256)    bf16  conv1 banded weights per kh (dj + pw folded)
    w2_ref : (5, 128, 256)   bf16  conv2 banded weights per kh
    wf1_ref: (640, 128)      bf16  fc1 (CHW flatten folded into rows, padded)
    o_ref  : (1, 1, 128)     f32   padded logits (first 10 lanes valid)
    """
    f32, bf16 = jnp.float32, jnp.bfloat16

    # ---- hoist the 4 H-phase input slabs (already bf16 from the wrapper) ----
    xv = [xp_ref[0, p, :, :] for p in range(4)]                      # 4 x (8, 96)
    # t = 2*q + di + kh  in 0..7  ->  needs input rows 4r + t, r = 0..6
    slab1 = [xv[t % 4][t // 4:t // 4 + 7, :] for t in range(8)]      # (7, 96) each

    # ---- conv1 (5x5) + ReLU + 2x2 maxpool, rows kept split by parity q ----
    # acc1[q][di][r, dj*128 + (j%2)*42 + (j//2)*6 + c] = conv1_out[2*(2r+q)+di, 2j+dj, c]
    acc1 = [[None, None], [None, None]]
    for kh in range(K):
        w = w1_ref[kh]                                               # (96, 256)
        for q in range(2):
            for di in range(2):
                d = jnp.dot(slab1[2 * q + di + kh], w, preferred_element_type=f32)
                acc1[q][di] = d if acc1[q][di] is None else acc1[q][di] + d
    bias1 = b1_ref[...]                                              # (1, 128) f32
    h1p = []
    for q in range(2):
        m = jnp.maximum(jnp.maximum(acc1[q][0][:, :LANES], acc1[q][0][:, LANES:]),
                        jnp.maximum(acc1[q][1][:, :LANES], acc1[q][1][:, LANES:]))
        h1p.append(jnp.maximum(m + bias1, 0.0).astype(bf16))         # (7, 128)

    # ---- conv2 slabs: contiguous row windows of the parity-split h1 ----
    slab2 = [h1p[s % 2][s // 2:s // 2 + OH2, :] for s in range(6)]   # (5, 128)

    # ---- conv2 (5x5) + ReLU + 2x2 maxpool ----
    acc2 = [None, None]
    for kh in range(K):
        w = w2_ref[kh]                                               # (128, 256)
        for di in range(2):
            d = jnp.dot(slab2[di + kh], w, preferred_element_type=f32)
            acc2[di] = d if acc2[di] is None else acc2[di] + d
    m2 = jnp.maximum(jnp.maximum(acc2[0][:, :LANES], acc2[0][:, LANES:]),
                     jnp.maximum(acc2[1][:, :LANES], acc2[1][:, LANES:]))
    h2 = jnp.maximum(m2 + b2_ref[...], 0.0)                          # (5, 128) f32

    # ---- flatten (128-lane-aligned row concat) -> fc1+relu -> fc2+relu -> fc3 ----
    h2_flat = jnp.concatenate([h2[i:i + 1, :] for i in range(OH2)], axis=1)  # (1,640)
    hf1 = jnp.dot(h2_flat.astype(bf16), wf1_ref[...], preferred_element_type=f32)
    hf1 = jnp.maximum(hf1 + bf1_ref[...], 0.0)                       # (1, 128)
    hf2 = jnp.dot(hf1.astype(bf16), wf2_ref[...], preferred_element_type=f32)
    hf2 = jnp.maximum(hf2 + bf2_ref[...], 0.0)                       # (1, 128)
    o_ref[0] = jnp.dot(hf2.astype(bf16), wf3_ref[...],
                       preferred_element_type=f32) + bf3_ref[...]    # (1, 128)


# ------------------------------ glue / wrappers ------------------------------ #
def _to_phase4(x_nhwc):
    """(B,32,32,3) -> (B,4,8,96): xp[b, p, r, pw*48 + m*3 + c] = x[b, 4r+p, 2m+pw, c]."""
    B, H, W, C = x_nhwc.shape
    xp = x_nhwc.reshape(B, H // 4, 4, W // 2, 2, C)        # [b, r, p, m, pw, c]
    xp = jnp.transpose(xp, (0, 2, 1, 4, 3, 5))             # [b, p, r, pw, m, c]
    return xp.reshape(B, 4, H // 4, 2 * (W // 2) * C)


def _banded_conv_weights(w, w_half, ow, colmap, row_pad):
    """HWIO (K,K,Cin,Cout) -> (K, row_pad, 2*LANES) banded per-kh matrices:
       band[kh, (pw*w_half + m)*Cin + ci, dj*LANES + colmap(j) + co] += w[kh,kw,ci,co]
       for every kw with (dj+kw)%2 == pw and m = j + (dj+kw)//2."""
    Kh, Kw, cin, cout = w.shape
    wn = np.asarray(w, np.float32)
    band = np.zeros((Kh, row_pad, 2 * LANES), np.float32)
    for kh in range(Kh):
        for kw in range(Kw):
            for dj in range(2):
                pw, off = (dj + kw) % 2, (dj + kw) // 2
                for j in range(ow):
                    m = j + off
                    r0 = (pw * w_half + m) * cin
                    c0 = dj * LANES + colmap(j)
                    band[kh, r0:r0 + cin, c0:c0 + cout] += wn[kh, kw]
    return band


def init_params(key):
    ks = jax.random.split(key, 10)
    s = 0.1
    raw = {
        "w1": s * jax.random.normal(ks[0], (K, K, CIN1, COUT1), jnp.float32),  # HWIO
        "b1": s * jax.random.normal(ks[1], (COUT1,), jnp.float32),
        "w2": s * jax.random.normal(ks[2], (K, K, CIN2, COUT2), jnp.float32),
        "b2": s * jax.random.normal(ks[3], (COUT2,), jnp.float32),
        "fc1_w": s * jax.random.normal(ks[4], (400, 120), jnp.float32),  # (in,out) = torch W.T
        "fc1_b": s * jax.random.normal(ks[5], (120,), jnp.float32),
        "fc2_w": s * jax.random.normal(ks[6], (120, 84), jnp.float32),
        "fc2_b": s * jax.random.normal(ks[7], (84,), jnp.float32),
        "fc3_w": s * jax.random.normal(ks[8], (84, 10), jnp.float32),
        "fc3_b": s * jax.random.normal(ks[9], (10,), jnp.float32),
    }

    # conv1 output columns laid out [pw2*42 + m2*6 + c] inside each dj half so
    # conv2's W-phase fold onto the contraction dim is free; conv2 uses [j*16 + c].
    colmap1 = lambda j: (j % 2) * (OW1 // 2) * COUT1 + (j // 2) * COUT1
    colmap2 = lambda j: j * COUT2
    w1_band = _banded_conv_weights(np.asarray(raw["w1"]), WH1, OW1, colmap1, XLANE1)
    w2_band = _banded_conv_weights(np.asarray(raw["w2"]), WH2, OW2, colmap2, LANES)

    b1p = np.zeros((1, LANES), np.float32)
    b1p[0, :OW1 * COUT1] = np.tile(np.asarray(raw["b1"]), OW1)   # per-channel, j-independent
    b2p = np.zeros((1, LANES), np.float32)
    b2p[0, :OW2 * COUT2] = np.tile(np.asarray(raw["b2"]), OW2)

    # fc1: fold the torch CHW flatten (idx = c*25 + i*5 + j) into the rows of a
    # lane-padded (640,128) matrix matching the kernel layout [i*128 + j*16 + c].
    fw = np.asarray(raw["fc1_w"], np.float32).reshape(COUT2, OH2, OW2, 120)   # [c,i,j,n]
    fw = fw.transpose(1, 2, 0, 3).reshape(OH2, OW2 * COUT2, 120)              # [i, j*16+c, n]
    wf1 = np.zeros((FC1_IN, LANES), np.float32)
    for i in range(OH2):
        wf1[i * LANES:i * LANES + OW2 * COUT2, :120] = fw[i]
    bf1 = np.zeros((1, LANES), np.float32); bf1[0, :120] = np.asarray(raw["fc1_b"])

    wf2 = np.zeros((LANES, LANES), np.float32); wf2[:120, :84] = np.asarray(raw["fc2_w"])
    bf2 = np.zeros((1, LANES), np.float32);     bf2[0, :84] = np.asarray(raw["fc2_b"])
    wf3 = np.zeros((LANES, LANES), np.float32); wf3[:84, :10] = np.asarray(raw["fc3_w"])
    bf3 = np.zeros((1, LANES), np.float32);     bf3[0, :10] = np.asarray(raw["fc3_b"])

    params = {
        "w1": jnp.asarray(w1_band, jnp.bfloat16),    # (5, 96, 256)
        "b1": jnp.asarray(b1p),                      # (1, 128) f32
        "w2": jnp.asarray(w2_band, jnp.bfloat16),    # (5, 128, 256)
        "b2": jnp.asarray(b2p),
        "wf1": jnp.asarray(wf1, jnp.bfloat16),       # (640, 128)
        "bf1": jnp.asarray(bf1),
        "wf2": jnp.asarray(wf2, jnp.bfloat16),       # (128, 128)
        "bf2": jnp.asarray(bf2),
        "wf3": jnp.asarray(wf3, jnp.bfloat16),       # (128, 128)
        "bf3": jnp.asarray(bf3),
    }
    return raw, params


@jax.jit
def forward(params, x_nchw):
    B, C, H, W = x_nchw.shape
    assert (C, H, W) == (CIN1, IH, IW), "this LeNet head is specialized to 3x32x32"
    x = jnp.transpose(x_nchw, (0, 2, 3, 1))                   # NCHW -> NHWC
    xp = _to_phase4(x).astype(jnp.bfloat16)                   # (B, 4, 8, 96) bf16

    out = pl.pallas_call(
        lenet_fused_kernel,
        out_shape=jax.ShapeDtypeStruct((B, 1, LANES), jnp.float32),
        grid=(B,),
        in_specs=[
            pl.BlockSpec((1, 4, IH // 4, XLANE1), lambda b: (b, 0, 0, 0)),
            pl.BlockSpec((K, XLANE1, 2 * LANES), lambda b: (0, 0, 0)),
            pl.BlockSpec((1, LANES), lambda b: (0, 0)),
            pl.BlockSpec((K, LANES, 2 * LANES), lambda b: (0, 0, 0)),
            pl.BlockSpec((1, LANES), lambda b: (0, 0)),
            pl.BlockSpec((FC1_IN, LANES), lambda b: (0, 0)),
            pl.BlockSpec((1, LANES), lambda b: (0, 0)),
            pl.BlockSpec((LANES, LANES), lambda b: (0, 0)),
            pl.BlockSpec((1, LANES), lambda b: (0, 0)),
            pl.BlockSpec((LANES, LANES), lambda b: (0, 0)),
            pl.BlockSpec((1, LANES), lambda b: (0, 0)),
        ],
        out_specs=pl.BlockSpec((1, 1, LANES), lambda b: (b, 0, 0)),
        compiler_params=pltpu.CompilerParams(dimension_semantics=("parallel",)),
    )(xp, params["w1"], params["b1"], params["w2"], params["b2"],
      params["wf1"], params["bf1"], params["wf2"], params["bf2"],
      params["wf3"], params["bf3"])

    return out[:, 0, :10]                                     # drop the lane padding


def reference_forward(raw, x_nchw):
    """Pure-JAX reference of the PyTorch module (weights rounded to bf16 to match
    the kernel's MXU operand precision)."""
    q = lambda a: a.astype(jnp.bfloat16).astype(jnp.float32)
    x = jnp.transpose(x_nchw, (0, 2, 3, 1))
    y = lax.conv_general_dilated(x, q(raw["w1"]), (1, 1), "VALID",
                                 dimension_numbers=("NHWC", "HWIO", "NHWC"))
    y = jax.nn.relu(y + raw["b1"])
    B = y.shape[0]
    y = y.reshape(B, OH1, 2, OW1, 2, COUT1).max(axis=(2, 4))
    y = lax.conv_general_dilated(y, q(raw["w2"]), (1, 1), "VALID",
                                 dimension_numbers=("NHWC", "HWIO", "NHWC"))
    y = jax.nn.relu(y + raw["b2"])
    y = y.reshape(B, OH2, 2, OW2, 2, COUT2).max(axis=(2, 4))
    y = jnp.transpose(y, (0, 3, 1, 2)).reshape(B, 400)        # torch CHW flatten
    y = jax.nn.relu(y @ q(raw["fc1_w"]) + raw["fc1_b"])
    y = jax.nn.relu(y @ q(raw["fc2_w"]) + raw["fc2_b"])
    return y @ q(raw["fc3_w"]) + raw["fc3_b"]


if __name__ == "__main__":
    key = jax.random.PRNGKey(0)
    k_in, k_par = jax.random.split(key)
    # LeNet-style head implies 3x32x32 input (16*5*5 flatten), NCHW like PyTorch.
    x = jax.random.normal(k_in, (2, CIN1, IH, IW), jnp.float32)
    raw, params = init_params(k_par)
    out = jax.block_until_ready(forward(params, x))
    assert out.shape == (2, 10) and out.dtype == jnp.float32
    assert bool(jnp.all(jnp.isfinite(out)))
    ref = reference_forward(raw, x)
    assert float(jnp.max(jnp.abs(out - ref))) < 0.15, "kernel/reference mismatch"
    print("KERNEL_OK")
</pallas_src>

<mosaic_0001>
module attributes {stable_mosaic.version = 11 : i64} {
  func.func @lenet_fused_kernel(%arg0: i32, %arg1: memref<1x4x8x96xbf16, #tpu.memory_space<vmem>>, %arg2: memref<5x96x256xbf16, #tpu.memory_space<vmem>>, %arg3: memref<1x128xf32, #tpu.memory_space<vmem>>, %arg4: memref<5x128x256xbf16, #tpu.memory_space<vmem>>, %arg5: memref<1x128xf32, #tpu.memory_space<vmem>>, %arg6: memref<640x128xbf16, #tpu.memory_space<vmem>>, %arg7: memref<1x128xf32, #tpu.memory_space<vmem>>, %arg8: memref<128x128xbf16, #tpu.memory_space<vmem>>, %arg9: memref<1x128xf32, #tpu.memory_space<vmem>>, %arg10: memref<128x128xbf16, #tpu.memory_space<vmem>>, %arg11: memref<1x128xf32, #tpu.memory_space<vmem>>, %arg12: memref<1x1x128xf32, #tpu.memory_space<vmem>>) attributes {dimension_semantics = [#tpu.dimension_semantics<parallel>], iteration_bounds = array<i64: 2>, scalar_prefetch = 0 : i64, scratch_operands = 0 : i64, tpu.core_type = #tpu.core_type<tc>, window_params = [{transform_indices = @transform_0, window_bounds = array<i64: 1, 4, 8, 96>}, {pipeline_mode = #tpu.pipeline_mode<synchronous>, transform_indices = @transform_1, window_bounds = array<i64: 5, 96, 256>}, {pipeline_mode = #tpu.pipeline_mode<synchronous>, transform_indices = @transform_2, window_bounds = array<i64: 1, 128>}, {pipeline_mode = #tpu.pipeline_mode<synchronous>, transform_indices = @transform_3, window_bounds = array<i64: 5, 128, 256>}, {pipeline_mode = #tpu.pipeline_mode<synchronous>, transform_indices = @transform_4, window_bounds = array<i64: 1, 128>}, {pipeline_mode = #tpu.pipeline_mode<synchronous>, transform_indices = @transform_5, window_bounds = array<i64: 640, 128>}, {pipeline_mode = #tpu.pipeline_mode<synchronous>, transform_indices = @transform_6, window_bounds = array<i64: 1, 128>}, {pipeline_mode = #tpu.pipeline_mode<synchronous>, transform_indices = @transform_7, window_bounds = array<i64: 128, 128>}, {pipeline_mode = #tpu.pipeline_mode<synchronous>, transform_indices = @transform_8, window_bounds = array<i64: 1, 128>}, {pipeline_mode = #tpu.pipeline_mode<synchronous>, transform_indices = @transform_9, window_bounds = array<i64: 128, 128>}, {pipeline_mode = #tpu.pipeline_mode<synchronous>, transform_indices = @transform_10, window_bounds = array<i64: 1, 128>}, {transform_indices = @transform_11, window_bounds = array<i64: 1, 1, 128>}]} {
    %c0 = arith.constant 0 : index
    %c0_0 = arith.constant 0 : index
    %c0_1 = arith.constant 0 : index
    %c0_2 = arith.constant 0 : index
    %0 = vector.load %arg1[%c0, %c0_0, %c0_1, %c0_2] : memref<1x4x8x96xbf16, #tpu.memory_space<vmem>>, vector<1x1x8x96xbf16>
    %1 = vector.shape_cast %0 : vector<1x1x8x96xbf16> to vector<8x96xbf16>
    %c0_3 = arith.constant 0 : index
    %c1 = arith.constant 1 : index
    %c0_4 = arith.constant 0 : index
    %c0_5 = arith.constant 0 : index
    %2 = vector.load %arg1[%c0_3, %c1, %c0_4, %c0_5] : memref<1x4x8x96xbf16, #tpu.memory_space<vmem>>, vector<1x1x8x96xbf16>
    %3 = vector.shape_cast %2 : vector<1x1x8x96xbf16> to vector<8x96xbf16>
    %c0_6 = arith.constant 0 : index
    %c2 = arith.constant 2 : index
    %c0_7 = arith.constant 0 : index
    %c0_8 = arith.constant 0 : index
    %4 = vector.load %arg1[%c0_6, %c2, %c0_7, %c0_8] : memref<1x4x8x96xbf16, #tpu.memory_space<vmem>>, vector<1x1x8x96xbf16>
    %5 = vector.shape_cast %4 : vector<1x1x8x96xbf16> to vector<8x96xbf16>
    %c0_9 = arith.constant 0 : index
    %c3 = arith.constant 3 : index
    %c0_10 = arith.constant 0 : index
    %c0_11 = arith.constant 0 : index
    %6 = vector.load %arg1[%c0_9, %c3, %c0_10, %c0_11] : memref<1x4x8x96xbf16, #tpu.memory_space<vmem>>, vector<1x1x8x96xbf16>
    %7 = vector.shape_cast %6 : vector<1x1x8x96xbf16> to vector<8x96xbf16>
    %8 = vector.extract_strided_slice %1 {offsets = [0, 0], sizes = [7, 96], strides = [1, 1]} : vector<8x96xbf16> to vector<7x96xbf16>
    %9 = vector.extract_strided_slice %3 {offsets = [0, 0], sizes = [7, 96], strides = [1, 1]} : vector<8x96xbf16> to vector<7x96xbf16>
    %10 = vector.extract_strided_slice %5 {offsets = [0, 0], sizes = [7, 96], strides = [1, 1]} : vector<8x96xbf16> to vector<7x96xbf16>
    %11 = vector.extract_strided_slice %7 {offsets = [0, 0], sizes = [7, 96], strides = [1, 1]} : vector<8x96xbf16> to vector<7x96xbf16>
    %12 = vector.extract_strided_slice %1 {offsets = [1, 0], sizes = [7, 96], strides = [1, 1]} : vector<8x96xbf16> to vector<7x96xbf16>
    %13 = vector.extract_strided_slice %3 {offsets = [1, 0], sizes = [7, 96], strides = [1, 1]} : vector<8x96xbf16> to vector<7x96xbf16>
    %14 = vector.extract_strided_slice %5 {offsets = [1, 0], sizes = [7, 96], strides = [1, 1]} : vector<8x96xbf16> to vector<7x96xbf16>
    %15 = vector.extract_strided_slice %7 {offsets = [1, 0], sizes = [7, 96], strides = [1, 1]} : vector<8x96xbf16> to vector<7x96xbf16>
    %c0_12 = arith.constant 0 : index
    %c0_13 = arith.constant 0 : index
    %c0_14 = arith.constant 0 : index
    %16 = vector.load %arg2[%c0_12, %c0_13, %c0_14] : memref<5x96x256xbf16, #tpu.memory_space<vmem>>, vector<1x96x256xbf16>
    %17 = vector.shape_cast %16 : vector<1x96x256xbf16> to vector<96x256xbf16>
    %cst = arith.constant dense<0.000000e+00> : vector<7x256xf32>
    %18 = tpu.matmul %8, %17, %cst {dimension_numbers = #tpu.dot_dimension_numbers<[1], [0], [0], [1], [0, 0, 1, 1], [], []>} : vector<7x96xbf16>, vector<96x256xbf16>, vector<7x256xf32> -> vector<7x256xf32>
    %cst_15 = arith.constant dense<0.000000e+00> : vector<7x256xf32>
    %19 = tpu.matmul %9, %17, %cst_15 {dimension_numbers = #tpu.dot_dimension_numbers<[1], [0], [0], [1], [0, 0, 1, 1], [], []>} : vector<7x96xbf16>, vector<96x256xbf16>, vector<7x256xf32> -> vector<7x256xf32>
    %cst_16 = arith.constant dense<0.000000e+00> : vector<7x256xf32>
    %20 = tpu.matmul %10, %17, %cst_16 {dimension_numbers = #tpu.dot_dimension_numbers<[1], [0], [0], [1], [0, 0, 1, 1], [], []>} : vector<7x96xbf16>, vector<96x256xbf16>, vector<7x256xf32> -> vector<7x256xf32>
    %cst_17 = arith.constant dense<0.000000e+00> : vector<7x256xf32>
    %21 = tpu.matmul %11, %17, %cst_17 {dimension_numbers = #tpu.dot_dimension_numbers<[1], [0], [0], [1], [0, 0, 1, 1], [], []>} : vector<7x96xbf16>, vector<96x256xbf16>, vector<7x256xf32> -> vector<7x256xf32>
    %c1_18 = arith.constant 1 : index
    %c0_19 = arith.constant 0 : index
    %c0_20 = arith.constant 0 : index
    %22 = vector.load %arg2[%c1_18, %c0_19, %c0_20] : memref<5x96x256xbf16, #tpu.memory_space<vmem>>, vector<1x96x256xbf16>
    %23 = vector.shape_cast %22 : vector<1x96x256xbf16> to vector<96x256xbf16>
    %cst_21 = arith.constant dense<0.000000e+00> : vector<7x256xf32>
    %24 = tpu.matmul %9, %23, %cst_21 {dimension_numbers = #tpu.dot_dimension_numbers<[1], [0], [0], [1], [0, 0, 1, 1], [], []>} : vector<7x96xbf16>, vector<96x256xbf16>, vector<7x256xf32> -> vector<7x256xf32>
    %25 = arith.addf %18, %24 : vector<7x256xf32>
    %cst_22 = arith.constant dense<0.000000e+00> : vector<7x256xf32>
    %26 = tpu.matmul %10, %23, %cst_22 {dimension_numbers = #tpu.dot_dimension_numbers<[1], [0], [0], [1], [0, 0, 1, 1], [], []>} : vector<7x96xbf16>, vector<96x256xbf16>, vector<7x256xf32> -> vector<7x256xf32>
    %27 = arith.addf %19, %26 : vector<7x256xf32>
    %cst_23 = arith.constant dense<0.000000e+00> : vector<7x256xf32>
    %28 = tpu.matmul %11, %23, %cst_23 {dimension_numbers = #tpu.dot_dimension_numbers<[1], [0], [0], [1], [0, 0, 1, 1], [], []>} : vector<7x96xbf16>, vector<96x256xbf16>, vector<7x256xf32> -> vector<7x256xf32>
    %29 = arith.addf %20, %28 : vector<7x256xf32>
    %cst_24 = arith.constant dense<0.000000e+00> : vector<7x256xf32>
    %30 = tpu.matmul %12, %23, %cst_24 {dimension_numbers = #tpu.dot_dimension_numbers<[1], [0], [0], [1], [0, 0, 1, 1], [], []>} : vector<7x96xbf16>, vector<96x256xbf16>, vector<7x256xf32> -> vector<7x256xf32>
    %31 = arith.addf %21, %30 : vector<7x256xf32>
    %c2_25 = arith.constant 2 : index
    %c0_26 = arith.constant 0 : index
    %c0_27 = arith.constant 0 : index
    %32 = vector.load %arg2[%c2_25, %c0_26, %c0_27] : memref<5x96x256xbf16, #tpu.memory_space<vmem>>, vector<1x96x256xbf16>
    %33 = vector.shape_cast %32 : vector<1x96x256xbf16> to vector<96x256xbf16>
    %cst_28 = arith.constant dense<0.000000e+00> : vector<7x256xf32>
    %34 = tpu.matmul %10, %33, %cst_28 {dimension_numbers = #tpu.dot_dimension_numbers<[1], [0], [0], [1], [0, 0, 1, 1], [], []>} : vector<7x96xbf16>, vector<96x256xbf16>, vector<7x256xf32> -> vector<7x256xf32>
    %35 = arith.addf %25, %34 : vector<7x256xf32>
    %cst_29 = arith.constant dense<0.000000e+00> : vector<7x256xf32>
    %36 = tpu.matmul %11, %33, %cst_29 {dimension_numbers = #tpu.dot_dimension_numbers<[1], [0], [0], [1], [0, 0, 1, 1], [], []>} : vector<7x96xbf16>, vector<96x256xbf16>, vector<7x256xf32> -> vector<7x256xf32>
    %37 = arith.addf %27, %36 : vector<7x256xf32>
    %cst_30 = arith.constant dense<0.000000e+00> : vector<7x256xf32>
    %38 = tpu.matmul %12, %33, %cst_30 {dimension_numbers = #tpu.dot_dimension_numbers<[1], [0], [0], [1], [0, 0, 1, 1], [], []>} : vector<7x96xbf16>, vector<96x256xbf16>, vector<7x256xf32> -> vector<7x256xf32>
    %39 = arith.addf %29, %38 : vector<7x256xf32>
    %cst_31 = arith.constant dense<0.000000e+00> : vector<7x256xf32>
    %40 = tpu.matmul %13, %33, %cst_31 {dimension_numbers = #tpu.dot_dimension_numbers<[1], [0], [0], [1], [0, 0, 1, 1], [], []>} : vector<7x96xbf16>, vector<96x256xbf16>, vector<7x256xf32> -> vector<7x256xf32>
    %41 = arith.addf %31, %40 : vector<7x256xf32>
    %c3_32 = arith.constant 3 : index
    %c0_33 = arith.constant 0 : index
    %c0_34 = arith.constant 0 : index
    %42 = vector.load %arg2[%c3_32, %c0_33, %c0_34] : memref<5x96x256xbf16, #tpu.memory_space<vmem>>, vector<1x96x256xbf16>
    %43 = vector.shape_cast %42 : vector<1x96x256xbf16> to vector<96x256xbf16>
    %cst_35 = arith.constant dense<0.000000e+00> : vector<7x256xf32>
    %44 = tpu.matmul %11, %43, %cst_35 {dimension_numbers = #tpu.dot_dimension_numbers<[1], [0], [0], [1], [0, 0, 1, 1], [], []>} : vector<7x96xbf16>, vector<96x256xbf16>, vector<7x256xf32> -> vector<7x256xf32>
    %45 = arith.addf %35, %44 : vector<7x256xf32>
    %cst_36 = arith.constant dense<0.000000e+00> : vector<7x256xf32>
    %46 = tpu.matmul %12, %43, %cst_36 {dimension_numbers = #tpu.dot_dimension_numbers<[1], [0], [0], [1], [0, 0, 1, 1], [], []>} : vector<7x96xbf16>, vector<96x256xbf16>, vector<7x256xf32> -> vector<7x256xf32>
    %47 = arith.addf %37, %46 : vector<7x256xf32>
    %cst_37 = arith.constant dense<0.000000e+00> : vector<7x256xf32>
    %48 = tpu.matmul %13, %43, %cst_37 {dimension_numbers = #tpu.dot_dimension_numbers<[1], [0], [0], [1], [0, 0, 1, 1], [], []>} : vector<7x96xbf16>, vector<96x256xbf16>, vector<7x256xf32> -> vector<7x256xf32>
    %49 = arith.addf %39, %48 : vector<7x256xf32>
    %cst_38 = arith.constant dense<0.000000e+00> : vector<7x256xf32>
    %50 = tpu.matmul %14, %43, %cst_38 {dimension_numbers = #tpu.dot_dimension_numbers<[1], [0], [0], [1], [0, 0, 1, 1], [], []>} : vector<7x96xbf16>, vector<96x256xbf16>, vector<7x256xf32> -> vector<7x256xf32>
    %51 = arith.addf %41, %50 : vector<7x256xf32>
    %c4 = arith.constant 4 : index
    %c0_39 = arith.constant 0 : index
    %c0_40 = arith.constant 0 : index
    %52 = vector.load %arg2[%c4, %c0_39, %c0_40] : memref<5x96x256xbf16, #tpu.memory_space<vmem>>, vector<1x96x256xbf16>
    %53 = vector.shape_cast %52 : vector<1x96x256xbf16> to vector<96x256xbf16>
    %cst_41 = arith.constant dense<0.000000e+00> : vector<7x256xf32>
    %54 = tpu.matmul %12, %53, %cst_41 {dimension_numbers = #tpu.dot_dimension_numbers<[1], [0], [0], [1], [0, 0, 1, 1], [], []>} : vector<7x96xbf16>, vector<96x256xbf16>, vector<7x256xf32> -> vector<7x256xf32>
    %55 = arith.addf %45, %54 : vector<7x256xf32>
    %cst_42 = arith.constant dense<0.000000e+00> : vector<7x256xf32>
    %56 = tpu.matmul %13, %53, %cst_42 {dimension_numbers = #tpu.dot_dimension_numbers<[1], [0], [0], [1], [0, 0, 1, 1], [], []>} : vector<7x96xbf16>, vector<96x256xbf16>, vector<7x256xf32> -> vector<7x256xf32>
    %57 = arith.addf %47, %56 : vector<7x256xf32>
    %cst_43 = arith.constant dense<0.000000e+00> : vector<7x256xf32>
    %58 = tpu.matmul %14, %53, %cst_43 {dimension_numbers = #tpu.dot_dimension_numbers<[1], [0], [0], [1], [0, 0, 1, 1], [], []>} : vector<7x96xbf16>, vector<96x256xbf16>, vector<7x256xf32> -> vector<7x256xf32>
    %59 = arith.addf %49, %58 : vector<7x256xf32>
    %cst_44 = arith.constant dense<0.000000e+00> : vector<7x256xf32>
    %60 = tpu.matmul %15, %53, %cst_44 {dimension_numbers = #tpu.dot_dimension_numbers<[1], [0], [0], [1], [0, 0, 1, 1], [], []>} : vector<7x96xbf16>, vector<96x256xbf16>, vector<7x256xf32> -> vector<7x256xf32>
    %61 = arith.addf %51, %60 : vector<7x256xf32>
    %c0_45 = arith.constant 0 : index
    %c0_46 = arith.constant 0 : index
    %62 = vector.load %arg3[%c0_45, %c0_46] : memref<1x128xf32, #tpu.memory_space<vmem>>, vector<1x128xf32>
    %63 = vector.extract_strided_slice %55 {offsets = [0, 0], sizes = [7, 128], strides = [1, 1]} : vector<7x256xf32> to vector<7x128xf32>
    %64 = vector.extract_strided_slice %55 {offsets = [0, 128], sizes = [7, 128], strides = [1, 1]} : vector<7x256xf32> to vector<7x128xf32>
    %65 = arith.maximumf %63, %64 : vector<7x128xf32>
    %66 = vector.extract_strided_slice %57 {offsets = [0, 0], sizes = [7, 128], strides = [1, 1]} : vector<7x256xf32> to vector<7x128xf32>
    %67 = vector.extract_strided_slice %57 {offsets = [0, 128], sizes = [7, 128], strides = [1, 1]} : vector<7x256xf32> to vector<7x128xf32>
    %68 = arith.maximumf %66, %67 : vector<7x128xf32>
    %69 = arith.maximumf %65, %68 : vector<7x128xf32>
    %70 = vector.broadcast %62 : vector<1x128xf32> to vector<7x128xf32>
    %71 = arith.addf %69, %70 : vector<7x128xf32>
    %cst_47 = arith.constant 0.000000e+00 : f32
    %72 = vector.broadcast %cst_47 : f32 to vector<7x128xf32>
    %73 = arith.maximumf %71, %72 : vector<7x128xf32>
    %74 = arith.truncf %73 : vector<7x128xf32> to vector<7x128xbf16>
    %75 = vector.extract_strided_slice %59 {offsets = [0, 0], sizes = [7, 128], strides = [1, 1]} : vector<7x256xf32> to vector<7x128xf32>
    %76 = vector.extract_strided_slice %59 {offsets = [0, 128], sizes = [7, 128], strides = [1, 1]} : vector<7x256xf32> to vector<7x128xf32>
    %77 = arith.maximumf %75, %76 : vector<7x128xf32>
    %78 = vector.extract_strided_slice %61 {offsets = [0, 0], sizes = [7, 128], strides = [1, 1]} : vector<7x256xf32> to vector<7x128xf32>
    %79 = vector.extract_strided_slice %61 {offsets = [0, 128], sizes = [7, 128], strides = [1, 1]} : vector<7x256xf32> to vector<7x128xf32>
    %80 = arith.maximumf %78, %79 : vector<7x128xf32>
    %81 = arith.maximumf %77, %80 : vector<7x128xf32>
    %82 = vector.broadcast %62 : vector<1x128xf32> to vector<7x128xf32>
    %83 = arith.addf %81, %82 : vector<7x128xf32>
    %cst_48 = arith.constant 0.000000e+00 : f32
    %84 = vector.broadcast %cst_48 : f32 to vector<7x128xf32>
    %85 = arith.maximumf %83, %84 : vector<7x128xf32>
    %86 = arith.truncf %85 : vector<7x128xf32> to vector<7x128xbf16>
    %87 = vector.extract_strided_slice %74 {offsets = [0, 0], sizes = [5, 128], strides = [1, 1]} : vector<7x128xbf16> to vector<5x128xbf16>
    %88 = vector.extract_strided_slice %86 {offsets = [0, 0], sizes = [5, 128], strides = [1, 1]} : vector<7x128xbf16> to vector<5x128xbf16>
    %89 = vector.extract_strided_slice %74 {offsets = [1, 0], sizes = [5, 128], strides = [1, 1]} : vector<7x128xbf16> to vector<5x128xbf16>
    %90 = vector.extract_strided_slice %86 {offsets = [1, 0], sizes = [5, 128], strides = [1, 1]} : vector<7x128xbf16> to vector<5x128xbf16>
    %91 = vector.extract_strided_slice %74 {offsets = [2, 0], sizes = [5, 128], strides = [1, 1]} : vector<7x128xbf16> to vector<5x128xbf16>
    %92 = vector.extract_strided_slice %86 {offsets = [2, 0], sizes = [5, 128], strides = [1, 1]} : vector<7x128xbf16> to vector<5x128xbf16>
    %c0_49 = arith.constant 0 : index
    %c0_50 = arith.constant 0 : index
    %c0_51 = arith.constant 0 : index
    %93 = vector.load %arg4[%c0_49, %c0_50, %c0_51] : memref<5x128x256xbf16, #tpu.memory_space<vmem>>, vector<1x128x256xbf16>
    %94 = vector.shape_cast %93 : vector<1x128x256xbf16> to vector<128x256xbf16>
    %cst_52 = arith.constant dense<0.000000e+00> : vector<5x256xf32>
    %95 = tpu.matmul %87, %94, %cst_52 {dimension_numbers = #tpu.dot_dimension_numbers<[1], [0], [0], [1], [0, 0, 1, 1], [], []>} : vector<5x128xbf16>, vector<128x256xbf16>, vector<5x256xf32> -> vector<5x256xf32>
    %cst_53 = arith.constant dense<0.000000e+00> : vector<5x256xf32>
    %96 = tpu.matmul %88, %94, %cst_53 {dimension_numbers = #tpu.dot_dimension_numbers<[1], [0], [0], [1], [0, 0, 1, 1], [], []>} : vector<5x128xbf16>, vector<128x256xbf16>, vector<5x256xf32> -> vector<5x256xf32>
    %c1_54 = arith.constant 1 : index
    %c0_55 = arith.constant 0 : index
    %c0_56 = arith.constant 0 : index
    %97 = vector.load %arg4[%c1_54, %c0_55, %c0_56] : memref<5x128x256xbf16, #tpu.memory_space<vmem>>, vector<1x128x256xbf16>
    %98 = vector.shape_cast %97 : vector<1x128x256xbf16> to vector<128x256xbf16>
    %cst_57 = arith.constant dense<0.000000e+00> : vector<5x256xf32>
    %99 = tpu.matmul %88, %98, %cst_57 {dimension_numbers = #tpu.dot_dimension_numbers<[1], [0], [0], [1], [0, 0, 1, 1], [], []>} : vector<5x128xbf16>, vector<128x256xbf16>, vector<5x256xf32> -> vector<5x256xf32>
    %100 = arith.addf %95, %99 : vector<5x256xf32>
    %cst_58 = arith.constant dense<0.000000e+00> : vector<5x256xf32>
    %101 = tpu.matmul %89, %98, %cst_58 {dimension_numbers = #tpu.dot_dimension_numbers<[1], [0], [0], [1], [0, 0, 1, 1], [], []>} : vector<5x128xbf16>, vector<128x256xbf16>, vector<5x256xf32> -> vector<5x256xf32>
    %102 = arith.addf %96, %101 : vector<5x256xf32>
    %c2_59 = arith.constant 2 : index
    %c0_60 = arith.constant 0 : index
    %c0_61 = arith.constant 0 : index
    %103 = vector.load %arg4[%c2_59, %c0_60, %c0_61] : memref<5x128x256xbf16, #tpu.memory_space<vmem>>, vector<1x128x256xbf16>
    %104 = vector.shape_cast %103 : vector<1x128x256xbf16> to vector<128x256xbf16>
    %cst_62 = arith.constant dense<0.000000e+00> : vector<5x256xf32>
    %105 = tpu.matmul %89, %104, %cst_62 {dimension_numbers = #tpu.dot_dimension_numbers<[1], [0], [0], [1], [0, 0, 1, 1], [], []>} : vector<5x128xbf16>, vector<128x256xbf16>, vector<5x256xf32> -> vector<5x256xf32>
    %106 = arith.addf %100, %105 : vector<5x256xf32>
    %cst_63 = arith.constant dense<0.000000e+00> : vector<5x256xf32>
    %107 = tpu.matmul %90, %104, %cst_63 {dimension_numbers = #tpu.dot_dimension_numbers<[1], [0], [0], [1], [0, 0, 1, 1], [], []>} : vector<5x128xbf16>, vector<128x256xbf16>, vector<5x256xf32> -> vector<5x256xf32>
    %108 = arith.addf %102, %107 : vector<5x256xf32>
    %c3_64 = arith.constant 3 : index
    %c0_65 = arith.constant 0 : index
    %c0_66 = arith.constant 0 : index
    %109 = vector.load %arg4[%c3_64, %c0_65, %c0_66] : memref<5x128x256xbf16, #tpu.memory_space<vmem>>, vector<1x128x256xbf16>
    %110 = vector.shape_cast %109 : vector<1x128x256xbf16> to vector<128x256xbf16>
    %cst_67 = arith.constant dense<0.000000e+00> : vector<5x256xf32>
    %111 = tpu.matmul %90, %110, %cst_67 {dimension_numbers = #tpu.dot_dimension_numbers<[1], [0], [0], [1], [0, 0, 1, 1], [], []>} : vector<5x128xbf16>, vector<128x256xbf16>, vector<5x256xf32> -> vector<5x256xf32>
    %112 = arith.addf %106, %111 : vector<5x256xf32>
    %cst_68 = arith.constant dense<0.000000e+00> : vector<5x256xf32>
    %113 = tpu.matmul %91, %110, %cst_68 {dimension_numbers = #tpu.dot_dimension_numbers<[1], [0], [0], [1], [0, 0, 1, 1], [], []>} : vector<5x128xbf16>, vector<128x256xbf16>, vector<5x256xf32> -> vector<5x256xf32>
    %114 = arith.addf %108, %113 : vector<5x256xf32>
    %c4_69 = arith.constant 4 : index
    %c0_70 = arith.constant 0 : index
    %c0_71 = arith.constant 0 : index
    %115 = vector.load %arg4[%c4_69, %c0_70, %c0_71] : memref<5x128x256xbf16, #tpu.memory_space<vmem>>, vector<1x128x256xbf16>
    %116 = vector.shape_cast %115 : vector<1x128x256xbf16> to vector<128x256xbf16>
    %cst_72 = arith.constant dense<0.000000e+00> : vector<5x256xf32>
    %117 = tpu.matmul %91, %116, %cst_72 {dimension_numbers = #tpu.dot_dimension_numbers<[1], [0], [0], [1], [0, 0, 1, 1], [], []>} : vector<5x128xbf16>, vector<128x256xbf16>, vector<5x256xf32> -> vector<5x256xf32>
    %118 = arith.addf %112, %117 : vector<5x256xf32>
    %cst_73 = arith.constant dense<0.000000e+00> : vector<5x256xf32>
    %119 = tpu.matmul %92, %116, %cst_73 {dimension_numbers = #tpu.dot_dimension_numbers<[1], [0], [0], [1], [0, 0, 1, 1], [], []>} : vector<5x128xbf16>, vector<128x256xbf16>, vector<5x256xf32> -> vector<5x256xf32>
    %120 = arith.addf %114, %119 : vector<5x256xf32>
    %121 = vector.extract_strided_slice %118 {offsets = [0, 0], sizes = [5, 128], strides = [1, 1]} : vector<5x256xf32> to vector<5x128xf32>
    %122 = vector.extract_strided_slice %118 {offsets = [0, 128], sizes = [5, 128], strides = [1, 1]} : vector<5x256xf32> to vector<5x128xf32>
    %123 = arith.maximumf %121, %122 : vector<5x128xf32>
    %124 = vector.extract_strided_slice %120 {offsets = [0, 0], sizes = [5, 128], strides = [1, 1]} : vector<5x256xf32> to vector<5x128xf32>
    %125 = vector.extract_strided_slice %120 {offsets = [0, 128], sizes = [5, 128], strides = [1, 1]} : vector<5x256xf32> to vector<5x128xf32>
    %126 = arith.maximumf %124, %125 : vector<5x128xf32>
    %127 = arith.maximumf %123, %126 : vector<5x128xf32>
    %c0_74 = arith.constant 0 : index
    %c0_75 = arith.constant 0 : index
    %128 = vector.load %arg5[%c0_74, %c0_75] : memref<1x128xf32, #tpu.memory_space<vmem>>, vector<1x128xf32>
    %129 = vector.broadcast %128 : vector<1x128xf32> to vector<5x128xf32>
    %130 = arith.addf %127, %129 : vector<5x128xf32>
    %cst_76 = arith.constant 0.000000e+00 : f32
    %131 = vector.broadcast %cst_76 : f32 to vector<5x128xf32>
    %132 = arith.maximumf %130, %131 : vector<5x128xf32>
    %133 = vector.extract_strided_slice %132 {offsets = [0, 0], sizes = [1, 128], strides = [1, 1]} : vector<5x128xf32> to vector<1x128xf32>
    %134 = vector.extract_strided_slice %132 {offsets = [1, 0], sizes = [1, 128], strides = [1, 1]} : vector<5x128xf32> to vector<1x128xf32>
    %135 = vector.extract_strided_slice %132 {offsets = [2, 0], sizes = [1, 128], strides = [1, 1]} : vector<5x128xf32> to vector<1x128xf32>
    %136 = vector.extract_strided_slice %132 {offsets = [3, 0], sizes = [1, 128], strides = [1, 1]} : vector<5x128xf32> to vector<1x128xf32>
    %137 = vector.extract_strided_slice %132 {offsets = [4, 0], sizes = [1, 128], strides = [1, 1]} : vector<5x128xf32> to vector<1x128xf32>
    %138 = tpu.concatenate %133, %134, %135, %136, %137 in 1 : vector<1x128xf32>, vector<1x128xf32>, vector<1x128xf32>, vector<1x128xf32>, vector<1x128xf32> -> vector<1x640xf32>
    %139 = arith.truncf %138 : vector<1x640xf32> to vector<1x640xbf16>
    %c0_77 = arith.constant 0 : index
    %c0_78 = arith.constant 0 : index
    %140 = vector.load %arg6[%c0_77, %c0_78] : memref<640x128xbf16, #tpu.memory_space<vmem>>, vector<640x128xbf16>
    %cst_79 = arith.constant dense<0.000000e+00> : vector<1x128xf32>
    %141 = tpu.matmul %139, %140, %cst_79 {dimension_numbers = #tpu.dot_dimension_numbers<[1], [0], [0], [1], [0, 0, 1, 1], [], []>} : vector<1x640xbf16>, vector<640x128xbf16>, vector<1x128xf32> -> vector<1x128xf32>
    %c0_80 = arith.constant 0 : index
    %c0_81 = arith.constant 0 : index
    %142 = vector.load %arg7[%c0_80, %c0_81] : memref<1x128xf32, #tpu.memory_space<vmem>>, vector<1x128xf32>
    %143 = arith.addf %141, %142 : vector<1x128xf32>
    %cst_82 = arith.constant 0.000000e+00 : f32
    %144 = vector.broadcast %cst_82 : f32 to vector<1x128xf32>
    %145 = arith.maximumf %143, %144 : vector<1x128xf32>
    %146 = arith.truncf %145 : vector<1x128xf32> to vector<1x128xbf16>
    %c0_83 = arith.constant 0 : index
    %c0_84 = arith.constant 0 : index
    %147 = vector.load %arg8[%c0_83, %c0_84] : memref<128x128xbf16, #tpu.memory_space<vmem>>, vector<128x128xbf16>
    %cst_85 = arith.constant dense<0.000000e+00> : vector<1x128xf32>
    %148 = tpu.matmul %146, %147, %cst_85 {dimension_numbers = #tpu.dot_dimension_numbers<[1], [0], [0], [1], [0, 0, 1, 1], [], []>} : vector<1x128xbf16>, vector<128x128xbf16>, vector<1x128xf32> -> vector<1x128xf32>
    %c0_86 = arith.constant 0 : index
    %c0_87 = arith.constant 0 : index
    %149 = vector.load %arg9[%c0_86, %c0_87] : memref<1x128xf32, #tpu.memory_space<vmem>>, vector<1x128xf32>
    %150 = arith.addf %148, %149 : vector<1x128xf32>
    %cst_88 = arith.constant 0.000000e+00 : f32
    %151 = vector.broadcast %cst_88 : f32 to vector<1x128xf32>
    %152 = arith.maximumf %150, %151 : vector<1x128xf32>
    %153 = arith.truncf %152 : vector<1x128xf32> to vector<1x128xbf16>
    %c0_89 = arith.constant 0 : index
    %c0_90 = arith.constant 0 : index
    %154 = vector.load %arg10[%c0_89, %c0_90] : memref<128x128xbf16, #tpu.memory_space<vmem>>, vector<128x128xbf16>
    %cst_91 = arith.constant dense<0.000000e+00> : vector<1x128xf32>
    %155 = tpu.matmul %153, %154, %cst_91 {dimension_numbers = #tpu.dot_dimension_numbers<[1], [0], [0], [1], [0, 0, 1, 1], [], []>} : vector<1x128xbf16>, vector<128x128xbf16>, vector<1x128xf32> -> vector<1x128xf32>
    %c0_92 = arith.constant 0 : index
    %c0_93 = arith.constant 0 : index
    %156 = vector.load %arg11[%c0_92, %c0_93] : memref<1x128xf32, #tpu.memory_space<vmem>>, vector<1x128xf32>
    %157 = arith.addf %155, %156 : vector<1x128xf32>
    %c0_94 = arith.constant 0 : index
    %c0_95 = arith.constant 0 : index
    %c0_96 = arith.constant 0 : index
    %158 = vector.load %arg12[%c0_94, %c0_95, %c0_96] : memref<1x1x128xf32, #tpu.memory_space<vmem>>, vector<1x1x128xf32>
    %159 = vector.shape_cast %158 : vector<1x1x128xf32> to vector<1x128xf32>
    %160 = vector.shape_cast %157 : vector<1x128xf32> to vector<1x1x128xf32>
    tpu.vector_store %arg12[%c0_94, %c0_95, %c0_96], %160 {strides = array<i32>} : memref<1x1x128xf32, #tpu.memory_space<vmem>>, vector<1x1x128xf32>,
    return
  }
  func.func @transform_0(%arg0: i32) -> (i32, i32, i32, i32) {
    %c0_i32 = arith.constant 0 : i32
    %c0_i32_0 = arith.constant 0 : i32
    %c0_i32_1 = arith.constant 0 : i32
    %c0_i32_2 = arith.constant 0 : i32
    return %arg0, %c0_i32, %c0_i32_0, %c0_i32_1 : i32, i32, i32, i32
  }
  func.func @transform_1(%arg0: i32) -> (i32, i32, i32) {
    %c0_i32 = arith.constant 0 : i32
    %c0_i32_0 = arith.constant 0 : i32
    %c0_i32_1 = arith.constant 0 : i32
    %c0_i32_2 = arith.constant 0 : i32
    return %c0_i32, %c0_i32_0, %c0_i32_1 : i32, i32, i32
  }
  func.func @transform_2(%arg0: i32) -> (i32, i32) {
    %c0_i32 = arith.constant 0 : i32
    %c0_i32_0 = arith.constant 0 : i32
    %c0_i32_1 = arith.constant 0 : i32
    return %c0_i32, %c0_i32_0 : i32, i32
  }
  func.func @transform_3(%arg0: i32) -> (i32, i32, i32) {
    %c0_i32 = arith.constant 0 : i32
    %c0_i32_0 = arith.constant 0 : i32
    %c0_i32_1 = arith.constant 0 : i32
    %c0_i32_2 = arith.constant 0 : i32
    return %c0_i32, %c0_i32_0, %c0_i32_1 : i32, i32, i32
  }
  func.func @transform_4(%arg0: i32) -> (i32, i32) {
    %c0_i32 = arith.constant 0 : i32
    %c0_i32_0 = arith.constant 0 : i32
    %c0_i32_1 = arith.constant 0 : i32
    return %c0_i32, %c0_i32_0 : i32, i32
  }
  func.func @transform_5(%arg0: i32) -> (i32, i32) {
    %c0_i32 = arith.constant 0 : i32
    %c0_i32_0 = arith.constant 0 : i32
    %c0_i32_1 = arith.constant 0 : i32
    return %c0_i32, %c0_i32_0 : i32, i32
  }
  func.func @transform_6(%arg0: i32) -> (i32, i32) {
    %c0_i32 = arith.constant 0 : i32
    %c0_i32_0 = arith.constant 0 : i32
    %c0_i32_1 = arith.constant 0 : i32
    return %c0_i32, %c0_i32_0 : i32, i32
  }
  func.func @transform_7(%arg0: i32) -> (i32, i32) {
    %c0_i32 = arith.constant 0 : i32
    %c0_i32_0 = arith.constant 0 : i32
    %c0_i32_1 = arith.constant 0 : i32
    return %c0_i32, %c0_i32_0 : i32, i32
  }
  func.func @transform_8(%arg0: i32) -> (i32, i32) {
    %c0_i32 = arith.constant 0 : i32
    %c0_i32_0 = arith.constant 0 : i32
    %c0_i32_1 = arith.constant 0 : i32
    return %c0_i32, %c0_i32_0 : i32, i32
  }
  func.func @transform_9(%arg0: i32) -> (i32, i32) {
    %c0_i32 = arith.constant 0 : i32
    %c0_i32_0 = arith.constant 0 : i32
    %c0_i32_1 = arith.constant 0 : i32
    return %c0_i32, %c0_i32_0 : i32, i32
  }
  func.func @transform_10(%arg0: i32) -> (i32, i32) {
    %c0_i32 = arith.constant 0 : i32
    %c0_i32_0 = arith.constant 0 : i32
    %c0_i32_1 = arith.constant 0 : i32
    return %c0_i32, %c0_i32_0 : i32, i32
  }
  func.func @transform_11(%arg0: i32) -> (i32, i32, i32) {
    %c0_i32 = arith.constant 0 : i32
    %c0_i32_0 = arith.constant 0 : i32
    %c0_i32_1 = arith.constant 0 : i32
    return %arg0, %c0_i32, %c0_i32_0 : i32, i32, i32
  }
}

</mosaic_0001>

<bundles_post_ra>
// kernel: forward.1
= control target key start
LH: loop header
LB: loop body
LE: loop exit
PB: predicated region body
PF: predicated region fallthrough
CT: control target
= control target key end

     0   :  { %16 = vsyncpa [#allocation3], 0  ;;  %s6043_s0 = inlined_call_operand.vmem [shape: bf16[2,4,8,96], index: 0, kind: input, shape index: {}]   ;;  %s6044_s1 = inlined_call_operand.vmem [shape: bf16[5,96,256], index: 1, kind: input, shape index: {}]   ;;  %s6045_s2 = inlined_call_operand.vmem [shape: f32[1,128], index: 2, kind: input, shape index: {}]   ;;  %s6046_s3 = inlined_call_operand.vmem [shape: bf16[5,128,256], index: 3, kind: input, shape index: {}]   ;;  %s6047_s4 = inlined_call_operand.vmem [shape: f32[1,128], index: 4, kind: input, shape index: {}]   ;;  %s6048_s5 = inlined_call_operand.vmem [shape: bf16[640,128], index: 5, kind: input, shape index: {}]   ;;  %s6049_s6 = inlined_call_operand.vmem [shape: f32[1,128], index: 6, kind: input, shape index: {}]   ;;  %s6050_s7 = inlined_call_operand.vmem [shape: bf16[128,128], index: 7, kind: input, shape index: {}]   ;;  %s6051_s8 = inlined_call_operand.vmem [shape: f32[1,128], index: 8, kind: input, shape index: {}]   ;;  %s6052_s9 = inlined_call_operand.vmem [shape: bf16[128,128], index: 9, kind: input, shape index: {}]   ;;  %s6053_s10 = inlined_call_operand.vmem [shape: f32[1,128], index: 10, kind: input, shape index: {}]   ;;  %s6054_s11 = inlined_call_operand.hbm [shape: f32[2,1,128], index: 11, kind: output, shape index: {}]  }
   0x1   :  { %18 = vsyncpa [#allocation3 + $0x1], 0  ;;  %s4110_s17 = smov 0   ;;  %s4112_s18 = smov 0  }
   0x2   :  { %s4114_s19 = smov 0   ;;  %s4116_s20 = smov 0  }
   0x3 LB: > { %6056 = sst [smem:[#allocation5_spill]] %s4044_s19  ;;  %s4131_s21 = sadd.s32 4294967295, %s4048_s20   ;;  %s4048_s20 = sphi %s4116_s20, %s6064_s20   ;;  %s4044_s19 = sphi %s4114_s19, %s6061_s19   ;;  %s4040_s18 = sphi %s4112_s18, %s6063_s18   ;;  %s4036_s17 = sphi %s4110_s17, %s6062_s17  }
   0x4   : > { %s2801_s22 = sadd.s32 4294967294, %s4048_s20   ;;  %s4135_s23 = sadd.s32 1, %s4048_s20  }
   0x5   : > { %s267_s24 = sadd.s32 1, %s4044_s19  ;;  %s264_s25 = ssub.s32 %s4048_s20, %s4135_s23 }
   0x6   : > { %p277_p0 = scmp.ne.s32.totalorder %s4044_s19, %s4040_s18  ;;  %p265_p1 = scmp.eq.s32.totalorder %s264_s25, 0 }
   0x7   : > { %p278_p2 = scmp.eq.s32.totalorder %s4131_s21, 1  ;;  %p283_p3 = scmp.ne.s32.totalorder %s4040_s18, %s4036_s17 }
   0x8   : > { %p284_p4 = scmp.eq.s32.totalorder %s2801_s22, 1  ;;  %p2804_p7 = scmp.ge.s32.totalorder %s4048_s20, 1 }
   0x9   : > { %s4146_s26 = scalar_select %p265_p1, %s4044_s19, %s267_s24  }
   0xa   : > { %p4148_p5 = por %p278_p2, %p277_p0  ;;  %p4152_p6 = por %p284_p4, %p283_p3 }
   0xb   : > { %6057 = sst [smem:[#allocation6_spill]] %s4146_s26  ;;  %p340_p8 = scmp.lt.s32.totalorder %s4048_s20, 3 }
   0xd   : > { %p341_p9 = pnand %p2804_p7, %p340_p8 }
   0xe   : > { %p379_p10 = scmp.lt.s32.totalorder (!%p341_p9), %s4131_s21, 1  ;;  %s377_s19 = sand.u32 (!%p341_p9), 1, %s4040_s18  }
   0xf   : > { %344 = sbr.rel (%p341_p9) target bundleno = 1085 (0x43d), region = 64  ;;  %s378_s25 = scalar_lea.vmem (!%p341_p9), [#allocation2], %s377_s19 }
  0x10   : > { %s2744_s30 = sshll.u32 (!%p341_p9), %s378_s25, 4  ;;  %s2734_s13 = scalar_lea.sflag (!%p341_p9), [#allocation3], %s377_s19  ;;  %s2745_s30 = int_to_ptr.vmem [resolvable:$true] %s2744_s30 }
  0x11   : > { %s4006_s16 = scalar_lea.hbm (!%p341_p9), %s6054_s11, 2 }
  0x14   : > { %v2864_v0 = vld [vmem:[%s6044_s1 + $0xb0] sm:$0xf]  ;;  %v3772_v1 = vld [vmem:[%s6044_s1 + $0xb4] sm:$0xf0]  ;;  %v3771_v2 = vld [vmem:[%s6044_s1 + $0xb4] sm:$0xf] }
  0x15   : > { %v4167_v3 = vor.u32 %v3772_v1, %v2864_v0  ;;  %v2866_v4 = vld [vmem:[%s6044_s1 + $0xb8] sm:$0xf0]  ;;  %v2914_v5 = vld [vmem:[%s6044_s1 + $0x50] sm:$0xf]  ;;  %v3760_v6 = vld [vmem:[%s6044_s1 + $0x54] sm:$0xf0] }
  0x16   : > { %v4178_v7 = vor.u32 %v3771_v2, %v2866_v4  ;;  %v4180_v8 = vor.u32 %v3760_v6, %v2914_v5  ;;  %v2856_v9 = vld [vmem:[%s6044_s1 + $0xa0] sm:$0xf]  ;;  %v3770_v10 = vld [vmem:[%s6044_s1 + $0xa4] sm:$0xf0]  ;;  %v3769_v11 = vld [vmem:[%s6044_s1 + $0xa4] sm:$0xf] }
  0x17   : > { %483 = vmatpush.bf16.msra.mxu3 %v4167_v3  ;;  %601 = vmatpush.bf16.msra.mxu0 %v4167_v3  ;;  %v4193_v12 = vor.u32 %v3770_v10, %v2856_v9  ;;  %v2858_v13 = vld [vmem:[%s6044_s1 + $0xa8] sm:$0xf0]  ;;  %v2906_v14 = vld [vmem:[%s6044_s1 + $0x40] sm:$0xf]  ;;  %v3758_v15 = vld [vmem:[%s6044_s1 + $0x44] sm:$0xf0] }
  0x18   : > { %496 = vmatpush.bf16.msra.mxu1 %v4178_v7  ;;  %572 = vmatpush.bf16.msra.mxu2 %v4180_v8  ;;  %v4206_v16 = vor.u32 %v3769_v11, %v2858_v13  ;;  %v4208_v17 = vor.u32 %v3758_v15, %v2906_v14  ;;  %v2848_v18 = vld [vmem:[%s6044_s1 + $0x90] sm:$0xf]  ;;  %v3768_v19 = vld [vmem:[%s6044_s1 + $0x94] sm:$0xf0]  ;;  %v3767_v20 = vld [vmem:[%s6044_s1 + $0x94] sm:$0xf] }
  0x19   : > { %v2850_v21 = vld [vmem:[%s6044_s1 + $0x98] sm:$0xf0]  ;;  %v2898_v22 = vld [vmem:[%s6044_s1 + $0x30] sm:$0xf]  ;;  %v3756_v23 = vld [vmem:[%s6044_s1 + $0x34] sm:$0xf0]  ;;  %v4230_v24 = vor.u32 %v3768_v19, %v2848_v18 }
  0x1a   : > { %v4234_v25 = vor.u32 %v3767_v20, %v2850_v21  ;;  %v4236_v26 = vor.u32 %v3756_v23, %v2898_v22  ;;  %v2840_v27 = vld [vmem:[%s6044_s1 + $0x80] sm:$0xf]  ;;  %v3766_v28 = vld [vmem:[%s6044_s1 + $0x84] sm:$0xf0]  ;;  %v3765_v29 = vld [vmem:[%s6044_s1 + $0x84] sm:$0xf] }
  0x1b   : > { %484 = vmatpush.bf16.msra.mxu3 %v4193_v12  ;;  %602 = vmatpush.bf16.msra.mxu0 %v4193_v12  ;;  %v2842_v30 = vld [vmem:[%s6044_s1 + $0x88] sm:$0xf0]  ;;  %v2890_v31 = vld [vmem:[%s6044_s1 + $0x20] sm:$0xf]  ;;  %v3754_v32 = vld [vmem:[%s6044_s1 + $0x24] sm:$0xf0]  ;;  %v4258_v33 = vor.u32 %v3766_v28, %v2840_v27 }
  0x1c   : > { %497 = vmatpush.bf16.msra.mxu1 %v4206_v16  ;;  %573 = vmatpush.bf16.msra.mxu2 %v4208_v17  ;;  %v4262_v34 = vor.u32 %v3765_v29, %v2842_v30  ;;  %v4264_v35 = vor.u32 %v3754_v32, %v2890_v31  ;;  %v2832_v36 = vld [vmem:[%s6044_s1 + $0x70] sm:$0xf]  ;;  %v3764_v37 = vld [vmem:[%s6044_s1 + $0x74] sm:$0xf0]  ;;  %v3763_v38 = vld [vmem:[%s6044_s1 + $0x74] sm:$0xf] }
  0x1d   : > { %v2834_v39 = vld [vmem:[%s6044_s1 + $0x78] sm:$0xf0]  ;;  %v2882_v40 = vld [vmem:[%s6044_s1 + $0x10] sm:$0xf]  ;;  %v3752_v41 = vld [vmem:[%s6044_s1 + $0x14] sm:$0xf0]  ;;  %v4287_v42 = vor.u32 %v3764_v37, %v2832_v36 }
  0x1e   : > { %v2824_v43 = vld [vmem:[%s6044_s1 + $0x60] sm:$0xf]  ;;  %v3762_v44 = vld [vmem:[%s6044_s1 + $0x64] sm:$0xf0]  ;;  %v3761_v45 = vld [vmem:[%s6044_s1 + $0x64] sm:$0xf]  ;;  %v4300_v46 = vor.u32 %v3763_v38, %v2834_v39  ;;  %v4302_v47 = vor.u32 %v3752_v41, %v2882_v40 }
  0x1f   : > { %485 = vmatpush.bf16.msra.mxu3 %v4230_v24  ;;  %603 = vmatpush.bf16.msra.mxu0 %v4230_v24  ;;  %v2826_v48 = vld [vmem:[%s6044_s1 + $0x68] sm:$0xf0]  ;;  %s380_s29 = scalar_select %p379_p10, %s4131_s21, 1  ;;  %v2874_v49 = vld [vmem:[%s6044_s1] sm:$0xf]  ;;  %v4322_v53 = vor.u32 %v3762_v44, %v2824_v43  ;;  %vm477_vm0 = vcmask 785408  }
  0x20   : > { %498 = vmatpush.bf16.msra.mxu1 %v4234_v25  ;;  %574 = vmatpush.bf16.msra.mxu2 %v4236_v26  ;;  %v3750_v50 = vld [vmem:[%s6044_s1 + $0x4] sm:$0xf0]  ;;  %v3759_v51 = vld [vmem:[%s6044_s1 + $0x54] sm:$0xf]  ;;  %v2916_v52 = vld [vmem:[%s6044_s1 + $0x58] sm:$0xf0]  ;;  %v4326_v54 = vor.u32 %v3761_v45, %v2826_v48 }
  0x21   : > { %s3748_s22 = sshll.u32 %s380_s29, 4  ;;  %v4328_v55 = vor.u32 %v3750_v50, %v2874_v49  ;;  %v4330_v56 = vor.u32 %v3759_v51, %v2916_v52  ;;  %v3757_v57 = vld [vmem:[%s6044_s1 + $0x44] sm:$0xf]  ;;  %v2908_v58 = vld [vmem:[%s6044_s1 + $0x48] sm:$0xf0] }
  0x22   : > { %s4335_s29 = scalar_lea.vmem %s6043_s0, %s3748_s22  ;;  %v4355_v61 = vor.u32 %v3757_v57, %v2908_v58  ;;  %v3755_v63 = vld [vmem:[%s6044_s1 + $0x34] sm:$0xf]  ;;  %v2900_v0 = vld [vmem:[%s6044_s1 + $0x38] sm:$0xf0]  ;;  %v3753_v2 = vld [vmem:[%s6044_s1 + $0x24] sm:$0xf]  ;;  %s2742_s22 = scalar_lea.hbm %s6054_s11, %s4131_s21 }
  0x23   : > { %486 = vmatpush.bf16.msra.mxu3 %v4258_v33  ;;  %604 = vmatpush.bf16.msra.mxu0 %v4258_v33  ;;  %v4348_v59 = vld [vmem:[%s4335_s29 + $0x4] sm:$0xf]  ;;  %v4351_v60 = vld [vmem:[%s4335_s29 + $0x8] sm:$0xf]  ;;  %v385_v62 = vld [vmem:[%s4335_s29] sm:$0xf]  ;;  %v4375_v1 = vor.u32 %v3755_v63, %v2900_v0 }
  0x24   : > { %499 = vmatpush.bf16.msra.mxu1 %v4262_v34  ;;  %575 = vmatpush.bf16.msra.mxu2 %v4264_v35  ;;  %v2892_v4 = vld [vmem:[%s6044_s1 + $0x28] sm:$0xf0]  ;;  %v3751_v6 = vld [vmem:[%s6044_s1 + $0x14] sm:$0xf]  ;;  %v2884_v9 = vld [vmem:[%s6044_s1 + $0x18] sm:$0xf0]  ;;  %v707_v18 = vunpack.c.l.b16 %v385_v62  ;;  %v929_v0 = vunpack.c.l.b16 %v4348_v59 }
  0x25   : > { %v4387_v5 = vor.u32 %v3753_v2, %v2892_v4  ;;  %v4399_v10 = vor.u32 %v3751_v6, %v2884_v9  ;;  %v3749_v11 = vld [vmem:[%s6044_s1 + $0x4] sm:$0xf]  ;;  %v2876_v13 = vld [vmem:[%s6044_s1 + $0x8] sm:$0xf0]  ;;  %v2988_v21 = vld [vmem:[%s6044_s1 + $0x110] sm:$0xf] }
  0x26   : > { %v4411_v14 = vor.u32 %v3749_v11, %v2876_v13  ;;  %v4418_v15 = vld [vmem:[%s4335_s29 + $0xc] sm:$0xf]  ;;  %v3784_v22 = vld [vmem:[%s6044_s1 + $0x114] sm:$0xf0]  ;;  %v2980_v27 = vld [vmem:[%s6044_s1 + $0x100] sm:$0xf] }
  0x27   : > { %487 = vmatpush.bf16.msra.mxu3 %v4287_v42  ;;  %605 = vmatpush.bf16.msra.mxu0 %v4287_v42  ;;  %v4455_v23 = vor.u32 %v3784_v22, %v2988_v21  ;;  %v3782_v28 = vld [vmem:[%s6044_s1 + $0x104] sm:$0xf0]  ;;  %v2972_v30 = vld [vmem:[%s6044_s1 + $0xf0] sm:$0xf]  ;;  %v3780_v31 = vld [vmem:[%s6044_s1 + $0xf4] sm:$0xf0] }
  0x28   : > { %500 = vmatpush.bf16.msra.mxu1 %v4300_v46  ;;  %576 = vmatpush.bf16.msra.mxu2 %v4302_v47  ;;  %v4473_v29 = vor.u32 %v3782_v28, %v2980_v27  ;;  %v3778_v32 = vld [vmem:[%s6044_s1 + $0xe4] sm:$0xf0]  ;;  %v3783_v37 = vld [vmem:[%s6044_s1 + $0x114] sm:$0xf]  ;;  %v3781_v39 = vld [vmem:[%s6044_s1 + $0x104] sm:$0xf] }
  0x29   : > { %v3774_v36 = vld [vmem:[%s6044_s1 + $0xc4] sm:$0xf0]  ;;  %v2982_v40 = vld [vmem:[%s6044_s1 + $0x108] sm:$0xf0]  ;;  %v2974_v43 = vld [vmem:[%s6044_s1 + $0xf8] sm:$0xf0] }
  0x2a   : > { %v4551_v41 = vor.u32 %v3781_v39, %v2982_v40  ;;  %v3777_v45 = vld [vmem:[%s6044_s1 + $0xe4] sm:$0xf]  ;;  %v3775_v48 = vld [vmem:[%s6044_s1 + $0xd4] sm:$0xf]  ;;  %v2958_v49 = vld [vmem:[%s6044_s1 + $0xd8] sm:$0xf0] }
  0x2b   : > { %488 = vmatpush.bf16.msra.mxu3 %v4322_v53  ;;  %606 = vmatpush.bf16.msra.mxu0 %v4322_v53  ;;  %v4595_v50 = vor.u32 %v3775_v48, %v2958_v49  ;;  %v3773_v51 = vld [vmem:[%s6044_s1 + $0xc4] sm:$0xf]  ;;  %v2950_v52 = vld [vmem:[%s6044_s1 + $0xc8] sm:$0xf0]  ;;  %v3048_v57 = vld [vmem:[%s6044_s1 + $0x160] sm:$0xf] }
  0x2c   : > { %501 = vmatpush.bf16.msra.mxu1 %v4326_v54  ;;  %577 = vmatpush.bf16.msra.mxu2 %v4328_v55  ;;  %v3794_v58 = vld [vmem:[%s6044_s1 + $0x164] sm:$0xf0]  ;;  %v3792_v63 = vld [vmem:[%s6044_s1 + $0x154] sm:$0xf0]  ;;  %v3032_v2 = vld [vmem:[%s6044_s1 + $0x140] sm:$0xf] }
  0x2d   : > { %v3790_v4 = vld [vmem:[%s6044_s1 + $0x144] sm:$0xf0]  ;;  %v3024_v6 = vld [vmem:[%s6044_s1 + $0x130] sm:$0xf]  ;;  %v3788_v9 = vld [vmem:[%s6044_s1 + $0x134] sm:$0xf0] }
  0x2e   : > { %2870 = vmatmul.msk.bf16.vlgmr.msra.gmra.mxu3 %vm477_vm0, %v4348_v59  ;;  %2922 = vmatmul.msk.bf16.vlgmr.msra.gmra.mxu0 %vm477_vm0, %v4351_v60  ;;  %v4678_v11 = vor.u32 %v3788_v9, %v3024_v6  ;;  %v3016_v13 = vld [vmem:[%s6044_s1 + $0x120] sm:$0xf]  ;;  %v3793_v22 = vld [vmem:[%s6044_s1 + $0x164] sm:$0xf]  ;;  %s2746_s12 = sshll.u32 %s2742_s22, 4  ;;  %s2747_s12 = int_to_ptr.hbm [resolvable:$true] %s2746_s12 }
  0x2f   : > { %585 = vmatpush.bf16.msrb.mxu3 %v4330_v56  ;;  %656 = vmatpush.bf16.msrb.mxu0 %v4167_v3  ;;  %v3116_v40 = vld [vmem:[%s6044_s1 + $0x1c0] sm:$0xf]  ;;  %s4000_s14 = sshra.s32 %s2747_s12, 4  ;;  %s4001_s14 = int_to_ptr.hbm [resolvable:$true] %s4000_s14 }
  0x30   : > { %614 = vmatpush.bf16.msrb.mxu1 %v4178_v7  ;;  %627 = vmatpush.bf16.msrb.mxu2 %v4180_v8  ;;  %s4002_s15 = scalar_lea.hbm %s4001_s14, 1  ;;  %p4007_p0 = scmp.lt.s32.totalorder %s4001_s14, %s6054_s11 }
  0x31   : > { %2871 = vmatmul.msk.bf16.vlgmr.msra.gmra.mxu1 %vm477_vm0, %v4348_v59  ;;  %2920 = vmatmul.msk.bf16.vlgmr.msra.gmra.mxu2 %vm477_vm0, %v385_v62  ;;  %p4003_p11 = scmp.ne.s32.totalorder %s4001_s14, %s4002_s15  ;;  %p4008_p1 = scmp.lt.s32.totalorder %s4006_s16, %s4002_s15 }
  0x33   : > { %586 = vmatpush.bf16.msrb.mxu3 %v4355_v61  ;;  %657 = vmatpush.bf16.msrb.mxu0 %v4193_v12  ;;  %p4004_p12 = pnand %p4003_p11, %p4148_p5  ;;  %p4009_p2 = por %p4008_p1, %p4007_p0 }
  0x34   : > { %615 = vmatpush.bf16.msrb.mxu1 %v4206_v16  ;;  %628 = vmatpush.bf16.msrb.mxu2 %v4208_v17 }
  0x35   : > { %p4005_p13 = pneg %p4004_p12 }
  0x37   : > { %587 = vmatpush.bf16.msrb.mxu3 %v4375_v1  ;;  %658 = vmatpush.bf16.msrb.mxu0 %v4230_v24  ;;  %p4010_p3 = pnand %p4009_p2, %p4005_p13 }
  0x38   : > { %616 = vmatpush.bf16.msrb.mxu1 %v4234_v25  ;;  %629 = vmatpush.bf16.msrb.mxu2 %v4236_v26 }
  0x3b   : > { %588 = vmatpush.bf16.msrb.mxu3 %v4387_v5  ;;  %659 = vmatpush.bf16.msrb.mxu0 %v4258_v33 }
  0x3c   : > { %617 = vmatpush.bf16.msrb.mxu1 %v4262_v34  ;;  %630 = vmatpush.bf16.msrb.mxu2 %v4264_v35 }
  0x3f   : > { %589 = vmatpush.bf16.msrb.mxu3 %v4399_v10  ;;  %660 = vmatpush.bf16.msrb.mxu0 %v4287_v42 }
  0x40   : > { %618 = vmatpush.bf16.msrb.mxu1 %v4300_v46  ;;  %631 = vmatpush.bf16.msrb.mxu2 %v4302_v47 }
  0x43   : > { %590 = vmatpush.bf16.msrb.mxu3 %v4411_v14  ;;  %661 = vmatpush.bf16.msrb.mxu0 %v4322_v53 }
  0x44   : > { %619 = vmatpush.bf16.msrb.mxu1 %v4326_v54  ;;  %632 = vmatpush.bf16.msrb.mxu2 %v4328_v55 }
  0x46   : > { %2926 = vmatmul.msk.bf16.vlgmr.msrb.gmra.mxu0 %vm477_vm0, %v4418_v15  ;;  %2921 = vmatmul.msk.bf16.vlgmr.msrb.gmra.mxu3 %vm477_vm0, %v385_v62  ;;  %v3040_v62 = vld [vmem:[%s6044_s1 + $0x150] sm:$0xf] }
  0x47   : > { %640 = vmatpush.bf16.msra.mxu3 %v4330_v56  ;;  %721 = vmatpush.bf16.msra.mxu0 %v4167_v3  ;;  %v708_v3 = vpack.c.b16 %v707_v18, %v707_v18  ;;  %v3795_v18 = vld [vmem:[%s6044_s1 + $0x174] sm:$0xf] }
  0x48   : > { %669 = vmatpush.bf16.msra.mxu1 %v4178_v7  ;;  %682 = vmatpush.bf16.msra.mxu2 %v4180_v8 }
  0x49   : > { %2923 = vmatmul.msk.bf16.vlgmr.msrb.gmra.mxu1 %vm477_vm0, %v4351_v60  ;;  %2924 = vmatmul.msk.bf16.vlgmr.msrb.gmra.mxu2 %vm477_vm0, %v4348_v59  ;;  %v712_v19 = vshll.u32 %v708_v3, 16  ;;  %v710_v20 = vshrl.u32 %v708_v3, 16  ;;  %v3058_v3 = vld [vmem:[%s6044_s1 + $0x178] sm:$0xf0] }
  0x4a   : > { %v4698_v21 = vor.u32 %v3795_v18, %v3058_v3  ;;  %v3803_v3 = vld [vmem:[%s6044_s1 + $0x1b4] sm:$0xf] }
  0x4b   : > { %641 = vmatpush.bf16.msra.mxu3 %v4355_v61  ;;  %722 = vmatpush.bf16.msra.mxu0 %v4193_v12  ;;  %v714_v12 = vrot.slane %v712_v19, 1 }
  0x4c   : > { %670 = vmatpush.bf16.msra.mxu1 %v4206_v16  ;;  %683 = vmatpush.bf16.msra.mxu2 %v4208_v17 }
  0x4f   : > { %642 = vmatpush.bf16.msra.mxu3 %v4375_v1  ;;  %723 = vmatpush.bf16.msra.mxu0 %v4230_v24  ;;  %v4457_v24 = vor.u32 %v714_v12, %v710_v20 }
  0x50   : > { %671 = vmatpush.bf16.msra.mxu1 %v4234_v25  ;;  %684 = vmatpush.bf16.msra.mxu2 %v4236_v26 }
  0x53   : > { %643 = vmatpush.bf16.msra.mxu3 %v4387_v5  ;;  %724 = vmatpush.bf16.msra.mxu0 %v4258_v33  ;;  %v3776_v33 = vld [vmem:[%s6044_s1 + $0xd4] sm:$0xf0] }
  0x54   : > { %672 = vmatpush.bf16.msra.mxu1 %v4262_v34  ;;  %685 = vmatpush.bf16.msra.mxu2 %v4264_v35 }
  0x57   : > { %644 = vmatpush.bf16.msra.mxu3 %v4399_v10  ;;  %725 = vmatpush.bf16.msra.mxu0 %v4287_v42  ;;  %v3779_v42 = vld [vmem:[%s6044_s1 + $0xf4] sm:$0xf] }
  0x58   : > { %673 = vmatpush.bf16.msra.mxu1 %v4300_v46  ;;  %686 = vmatpush.bf16.msra.mxu2 %v4302_v47  ;;  %v4571_v44 = vor.u32 %v3779_v42, %v2974_v43 }
  0x5b   : > { %645 = vmatpush.bf16.msra.mxu3 %v4411_v14  ;;  %726 = vmatpush.bf16.msra.mxu0 %v4322_v53  ;;  %v4607_v53 = vor.u32 %v3773_v51, %v2950_v52  ;;  %v1127_v51 = vunpack.c.l.b16 %v4351_v60  ;;  %v3100_v52 = vld [vmem:[%s6044_s1 + $0x1a0] sm:$0xf] }
  0x5c   : > { %674 = vmatpush.bf16.msra.mxu1 %v4326_v54  ;;  %687 = vmatpush.bf16.msra.mxu2 %v4328_v55 }
  0x5e   : > { %2930 = vmatmul.msk.bf16.vlgmr.msra.gmra.mxu0 %vm477_vm0, %v4457_v24  ;;  %2925 = vmatmul.msk.bf16.vlgmr.msra.gmra.mxu3 %vm477_vm0, %v4348_v59  ;;  %v4666_v59 = vor.u32 %v3790_v4, %v3032_v2  ;;  %v3126_v2 = vld [vmem:[%s6044_s1 + $0x1d8] sm:$0xf0] }
  0x5f   : > { %695 = vmatpush.bf16.msrb.mxu3 %v4330_v56  ;;  %846 = vmatpush.bf16.msrb.mxu0 %v4455_v23 }
  0x60   : > { %734 = vmatpush.bf16.msrb.mxu1 %v4178_v7  ;;  %747 = vmatpush.bf16.msrb.mxu2 %v4180_v8  ;;  %v4493_v7 = vor.u32 %v3780_v31, %v2972_v30  ;;  %v2964_v8 = vld [vmem:[%s6044_s1 + $0xe0] sm:$0xf]  ;;  %v3042_v30 = vld [vmem:[%s6044_s1 + $0x158] sm:$0xf0] }
  0x61   : > { %2927 = vmatmul.msk.bf16.vlgmr.msra.gmra.mxu1 %vm477_vm0, %v4418_v15  ;;  %2928 = vmatmul.msk.bf16.vlgmr.msra.gmra.mxu2 %vm477_vm0, %v4351_v60 }
  0x63   : > { %696 = vmatpush.bf16.msrb.mxu3 %v4355_v61  ;;  %847 = vmatpush.bf16.msrb.mxu0 %v4473_v29 }
  0x64   : > { %735 = vmatpush.bf16.msrb.mxu1 %v4206_v16  ;;  %748 = vmatpush.bf16.msrb.mxu2 %v4208_v17  ;;  %v4505_v16 = vor.u32 %v3778_v32, %v2964_v8  ;;  %v2956_v17 = vld [vmem:[%s6044_s1 + $0xd0] sm:$0xf]  ;;  %v3034_v8 = vld [vmem:[%s6044_s1 + $0x148] sm:$0xf0] }
  0x67   : > { %697 = vmatpush.bf16.msrb.mxu3 %v4375_v1  ;;  %848 = vmatpush.bf16.msrb.mxu0 %v4493_v7 }
  0x68   : > { %736 = vmatpush.bf16.msrb.mxu1 %v4234_v25  ;;  %749 = vmatpush.bf16.msrb.mxu2 %v4236_v26  ;;  %v4517_v25 = vor.u32 %v3776_v33, %v2956_v17  ;;  %v2948_v26 = vld [vmem:[%s6044_s1 + $0xc0] sm:$0xf]  ;;  %v3026_v17 = vld [vmem:[%s6044_s1 + $0x138] sm:$0xf0] }
  0x6b   : > { %698 = vmatpush.bf16.msrb.mxu3 %v4387_v5  ;;  %849 = vmatpush.bf16.msrb.mxu0 %v4505_v16 }
  0x6c   : > { %737 = vmatpush.bf16.msrb.mxu1 %v4262_v34  ;;  %750 = vmatpush.bf16.msrb.mxu2 %v4264_v35  ;;  %v2990_v34 = vld [vmem:[%s6044_s1 + $0x118] sm:$0xf0]  ;;  %v4535_v35 = vor.u32 %v3774_v36, %v2948_v26  ;;  %v3018_v26 = vld [vmem:[%s6044_s1 + $0x128] sm:$0xf0] }
  0x6d   : > { %v4537_v38 = vor.u32 %v3783_v37, %v2990_v34  ;;  %v3124_v37 = vld [vmem:[%s6044_s1 + $0x1d0] sm:$0xf]  ;;  %v3808_v34 = vld [vmem:[%s6044_s1 + $0x1d4] sm:$0xf0] }
  0x6e   : > { %v4784_v39 = vor.u32 %v3808_v34, %v3124_v37  ;;  %v3797_v37 = vld [vmem:[%s6044_s1 + $0x184] sm:$0xf]  ;;  %v3086_v34 = vld [vmem:[%s6044_s1 + $0x188] sm:$0xf0] }
  0x6f   : > { %699 = vmatpush.bf16.msrb.mxu3 %v4399_v10  ;;  %850 = vmatpush.bf16.msrb.mxu0 %v4517_v25 }
  0x70   : > { %738 = vmatpush.bf16.msrb.mxu1 %v4300_v46  ;;  %751 = vmatpush.bf16.msrb.mxu2 %v4302_v47  ;;  %v2966_v46 = vld [vmem:[%s6044_s1 + $0xe8] sm:$0xf0] }
  0x71   : > { %v4583_v47 = vor.u32 %v3777_v45, %v2966_v46  ;;  %v3804_v45 = vld [vmem:[%s6044_s1 + $0x1b4] sm:$0xf0] }
  0x73   : > { %700 = vmatpush.bf16.msrb.mxu3 %v4411_v14  ;;  %851 = vmatpush.bf16.msrb.mxu0 %v4535_v35 }
  0x74   : > { %739 = vmatpush.bf16.msrb.mxu1 %v4326_v54  ;;  %752 = vmatpush.bf16.msrb.mxu2 %v4328_v55  ;;  %v3056_v54 = vld [vmem:[%s6044_s1 + $0x170] sm:$0xf]  ;;  %v3796_v55 = vld [vmem:[%s6044_s1 + $0x174] sm:$0xf0] }
  0x76   : > { %2994 = vmatmul.msk.bf16.vlgmr.msrb.gmra.mxu0 %vm477_vm0, %v4351_v60  ;;  %2929 = vmatmul.msk.bf16.vlgmr.msrb.gmra.mxu3 %vm477_vm0, %v4351_v60 }
  0x77   : > { %760 = vmatpush.bf16.msra.mxu3 %v4330_v56  ;;  %902 = vmatpush.bf16.msra.mxu0 %v4455_v23  ;;  %v4617_v56 = vor.u32 %v3796_v55, %v3056_v54  ;;  %v1128_v55 = vpack.c.b16 %v1127_v51, %v1127_v51 }
  0x78   : > { %859 = vmatpush.bf16.msra.mxu1 %v4537_v38  ;;  %874 = vmatpush.bf16.msra.mxu2 %v4455_v23 }
  0x79   : > { %2931 = vmatmul.msk.bf16.vlgmr.msrb.gmra.mxu1 %vm477_vm0, %v4457_v24  ;;  %2932 = vmatmul.msk.bf16.vlgmr.msrb.gmra.mxu2 %vm477_vm0, %v4418_v15 }
  0x7b   : > { %761 = vmatpush.bf16.msra.mxu3 %v4355_v61  ;;  %903 = vmatpush.bf16.msra.mxu0 %v4473_v29  ;;  %v4633_v61 = vor.u32 %v3794_v58, %v3048_v57  ;;  %v3800_v57 = vld [vmem:[%s6044_s1 + $0x194] sm:$0xf0] }
  0x7c   : > { %860 = vmatpush.bf16.msra.mxu1 %v4551_v41  ;;  %875 = vmatpush.bf16.msra.mxu2 %v4473_v29 }
  0x7f   : > { %762 = vmatpush.bf16.msra.mxu3 %v4375_v1  ;;  %904 = vmatpush.bf16.msra.mxu0 %v4493_v7  ;;  %v4654_v1 = vor.u32 %v3792_v63, %v3040_v62  ;;  %v1132_v62 = vshll.u32 %v1128_v55, 16  ;;  %v3084_v63 = vld [vmem:[%s6044_s1 + $0x180] sm:$0xf] }
  0x80   : > { %861 = vmatpush.bf16.msra.mxu1 %v4571_v44  ;;  %876 = vmatpush.bf16.msra.mxu2 %v4493_v7 }
  0x83   : > { %763 = vmatpush.bf16.msra.mxu3 %v4387_v5  ;;  %905 = vmatpush.bf16.msra.mxu0 %v4505_v16  ;;  %v930_v5 = vpack.c.b16 %v929_v0, %v929_v0  ;;  %v3798_v0 = vld [vmem:[%s6044_s1 + $0x184] sm:$0xf0] }
  0x84   : > { %862 = vmatpush.bf16.msra.mxu1 %v4583_v47  ;;  %877 = vmatpush.bf16.msra.mxu2 %v4505_v16  ;;  %v4865_v4 = vor.u32 %v3798_v0, %v3084_v63 }
  0x85   : > { %v932_v19 = vshrl.u32 %v930_v5, 16 }
  0x87   : > { %764 = vmatpush.bf16.msra.mxu3 %v4399_v10  ;;  %906 = vmatpush.bf16.msra.mxu0 %v4517_v25  ;;  %v934_v10 = vshll.u32 %v930_v5, 16  ;;  %v1130_v5 = vshrl.u32 %v1128_v55, 16 }
  0x88   : > { %863 = vmatpush.bf16.msra.mxu1 %v4595_v50  ;;  %878 = vmatpush.bf16.msra.mxu2 %v4517_v25 }
  0x89   : > { %v936_v20 = vrot.slane %v934_v10, 1 }
  0x8b   : > { %765 = vmatpush.bf16.msra.mxu3 %v4411_v14  ;;  %907 = vmatpush.bf16.msra.mxu0 %v4535_v35  ;;  %v3786_v14 = vld [vmem:[%s6044_s1 + $0x124] sm:$0xf0]  ;;  %v4708_v27 = vor.u32 %v936_v20, %v932_v19  ;;  %v3110_v19 = vld [vmem:[%s6044_s1 + $0x1b8] sm:$0xf0] }
  0x8c   : > { %864 = vmatpush.bf16.msra.mxu1 %v4607_v53  ;;  %879 = vmatpush.bf16.msra.mxu2 %v4535_v35  ;;  %v4696_v12 = vor.u32 %v3786_v14, %v3016_v13  ;;  %v3805_v13 = vld [vmem:[%s6044_s1 + $0x1c4] sm:$0xf] }
  0x8e   : > { %2933 = vmatmul.msk.bf16.vlgmr.msra.gmra.mxu3 %vm477_vm0, %v4418_v15  ;;  %2998 = vmatmul.msk.bf16.vlgmr.msra.gmra.mxu0 %vm477_vm0, %v4457_v24 }
  0x8f   : > { %887 = vmatpush.bf16.msrb.mxu3 %v4537_v38  ;;  %1044 = vmatpush.bf16.msrb.mxu0 %v4617_v56 }
  0x90   : > { %915 = vmatpush.bf16.msrb.mxu1 %v4537_v38  ;;  %943 = vmatpush.bf16.msrb.mxu2 %v4455_v23  ;;  %v3050_v23 = vld [vmem:[%s6044_s1 + $0x168] sm:$0xf0] }
  0x91   : > { %2995 = vmatmul.msk.bf16.vlgmr.msra.gmra.mxu1 %vm477_vm0, %v4351_v60  ;;  %2996 = vmatmul.msk.bf16.vlgmr.msra.gmra.mxu2 %vm477_vm0, %v4418_v15  ;;  %v4714_v28 = vor.u32 %v3793_v22, %v3050_v23 }
  0x93   : > { %888 = vmatpush.bf16.msrb.mxu3 %v4551_v41  ;;  %1045 = vmatpush.bf16.msrb.mxu0 %v4633_v61 }
  0x94   : > { %916 = vmatpush.bf16.msrb.mxu1 %v4551_v41  ;;  %944 = vmatpush.bf16.msrb.mxu2 %v4473_v29  ;;  %v3791_v29 = vld [vmem:[%s6044_s1 + $0x154] sm:$0xf] }
  0x95   : > { %v4734_v31 = vor.u32 %v3791_v29, %v3042_v30  ;;  %v4913_v29 = vor.u32 %v3803_v3, %v3110_v19 }
  0x97   : > { %889 = vmatpush.bf16.msrb.mxu3 %v4571_v44  ;;  %1046 = vmatpush.bf16.msrb.mxu0 %v4654_v1 }
  0x98   : > { %917 = vmatpush.bf16.msrb.mxu1 %v4571_v44  ;;  %945 = vmatpush.bf16.msrb.mxu2 %v4493_v7  ;;  %v3789_v7 = vld [vmem:[%s6044_s1 + $0x144] sm:$0xf] }
  0x99   : > { %v4746_v32 = vor.u32 %v3789_v7, %v3034_v8  ;;  %v3801_v7 = vld [vmem:[%s6044_s1 + $0x1a4] sm:$0xf]  ;;  %v3102_v8 = vld [vmem:[%s6044_s1 + $0x1a8] sm:$0xf0] }
  0x9b   : > { %890 = vmatpush.bf16.msrb.mxu3 %v4583_v47  ;;  %1047 = vmatpush.bf16.msrb.mxu0 %v4666_v59 }
  0x9c   : > { %918 = vmatpush.bf16.msrb.mxu1 %v4583_v47  ;;  %946 = vmatpush.bf16.msrb.mxu2 %v4505_v16  ;;  %v3787_v16 = vld [vmem:[%s6044_s1 + $0x134] sm:$0xf] }
  0x9d   : > { %v4758_v33 = vor.u32 %v3787_v16, %v3026_v17  ;;  %v3799_v16 = vld [vmem:[%s6044_s1 + $0x194] sm:$0xf]  ;;  %v3094_v17 = vld [vmem:[%s6044_s1 + $0x198] sm:$0xf0] }
  0x9f   : > { %891 = vmatpush.bf16.msrb.mxu3 %v4595_v50  ;;  %1048 = vmatpush.bf16.msrb.mxu0 %v4678_v11 }
  0xa0   : > { %919 = vmatpush.bf16.msrb.mxu1 %v4595_v50  ;;  %947 = vmatpush.bf16.msrb.mxu2 %v4517_v25  ;;  %v3785_v25 = vld [vmem:[%s6044_s1 + $0x124] sm:$0xf] }
  0xa1   : > { %v4770_v36 = vor.u32 %v3785_v25, %v3018_v26 }
  0xa3   : > { %892 = vmatpush.bf16.msrb.mxu3 %v4607_v53  ;;  %1049 = vmatpush.bf16.msrb.mxu0 %v4696_v12 }
  0xa4   : > { %920 = vmatpush.bf16.msrb.mxu1 %v4607_v53  ;;  %948 = vmatpush.bf16.msrb.mxu2 %v4535_v35 }
  0xa6   : > { %2997 = vmatmul.msk.bf16.vlgmr.msrb.gmra.mxu3 %vm477_vm0, %v4418_v15  ;;  %3062 = vmatmul.msk.bf16.vlgmr.msrb.gmra.mxu0 %vm477_vm0, %v4418_v15 }
  0xa7   : > { %956 = vmatpush.bf16.msra.mxu3 %v4537_v38  ;;  %1100 = vmatpush.bf16.msra.mxu0 %v4617_v56 }
  0xa8   : > { %1057 = vmatpush.bf16.msra.mxu1 %v4698_v21  ;;  %1072 = vmatpush.bf16.msra.mxu2 %v4617_v56 }
  0xa9   : > { %2999 = vmatmul.msk.bf16.vlgmr.msrb.gmra.mxu1 %vm477_vm0, %v4457_v24  ;;  %3000 = vmatmul.msk.bf16.vlgmr.msrb.gmra.mxu2 %vm477_vm0, %v4708_v27 }
  0xab   : > { %957 = vmatpush.bf16.msra.mxu3 %v4551_v41  ;;  %1101 = vmatpush.bf16.msra.mxu0 %v4633_v61  ;;  %v4780_v35 = vpop.f32.mrf.mxu0  ;;  %v3806_v41 = vld [vmem:[%s6044_s1 + $0x1c4] sm:$0xf0] }
  0xac   : > { %1058 = vmatpush.bf16.msra.mxu1 %v4714_v28  ;;  %1073 = vmatpush.bf16.msra.mxu2 %v4633_v61  ;;  %v4800_v42 = vor.u32 %v3806_v41, %v3116_v40 }
  0xae   : > { %v4782_v38 = vpop.f32.mrf.mxu1 }
  0xaf   : > { %958 = vmatpush.bf16.msra.mxu3 %v4571_v44  ;;  %1102 = vmatpush.bf16.msra.mxu0 %v4654_v1  ;;  %v3108_v44 = vld [vmem:[%s6044_s1 + $0x1b0] sm:$0xf] }
  0xb0   : > { %1059 = vmatpush.bf16.msra.mxu1 %v4734_v31  ;;  %1074 = vmatpush.bf16.msra.mxu2 %v4654_v1 }
  0xb1   : > { %v490_v43 = vpop.f32.mrf.mxu3 }
  0xb3   : > { %959 = vmatpush.bf16.msra.mxu3 %v4583_v47  ;;  %1103 = vmatpush.bf16.msra.mxu0 %v4666_v59  ;;  %v610_v47 = vpop.f32.mrf.mxu0 }
  0xb4   : > { %1060 = vmatpush.bf16.msra.mxu1 %v4746_v32  ;;  %1075 = vmatpush.bf16.msra.mxu2 %v4666_v59  ;;  %v579_v46 = vpop.f32.mrf.mxu2 }
  0xb5   : > { %v4816_v48 = vadd.f32 %v579_v46, %v490_v43 }
  0xb6   : > { %v505_v49 = vpop.f32.mrf.mxu1 }
  0xb7   : > { %960 = vmatpush.bf16.msra.mxu3 %v4595_v50  ;;  %1104 = vmatpush.bf16.msra.mxu0 %v4678_v11  ;;  %v4822_v50 = vor.u32 %v3804_v45, %v3108_v44 }
  0xb8   : > { %1061 = vmatpush.bf16.msra.mxu1 %v4758_v33  ;;  %1076 = vmatpush.bf16.msra.mxu2 %v4678_v11 }
  0xb9   : > { %v492_v60 = vpop.f32.mrf.mxu3 }
  0xbb   : > { %961 = vmatpush.bf16.msra.mxu3 %v4607_v53  ;;  %1105 = vmatpush.bf16.msra.mxu0 %v4696_v12  ;;  %v3802_v53 = vld [vmem:[%s6044_s1 + $0x1a4] sm:$0xf0] }
  0xbc   : > { %1062 = vmatpush.bf16.msra.mxu1 %v4770_v36  ;;  %1077 = vmatpush.bf16.msra.mxu2 %v4696_v12  ;;  %v4835_v54 = vor.u32 %v3802_v53, %v3100_v52  ;;  %v581_v58 = vpop.f32.mrf.mxu2 }
  0xbe   : > { %3001 = vmatmul.msk.bf16.vlgmr.msra.gmra.mxu3 %vm477_vm0, %v4708_v27  ;;  %3066 = vmatmul.msk.bf16.vlgmr.msra.gmra.mxu0 %vm477_vm0, %v4708_v27 }
  0xbf   : > { %1085 = vmatpush.bf16.msrb.mxu3 %v4698_v21  ;;  %1242 = vmatpush.bf16.msrb.mxu0 %v4784_v39 }
  0xc0   : > { %1113 = vmatpush.bf16.msrb.mxu1 %v4698_v21  ;;  %1141 = vmatpush.bf16.msrb.mxu2 %v4617_v56  ;;  %v3092_v56 = vld [vmem:[%s6044_s1 + $0x190] sm:$0xf] }
  0xc1   : > { %3063 = vmatmul.msk.bf16.vlgmr.msra.gmra.mxu1 %vm477_vm0, %v4418_v15  ;;  %3064 = vmatmul.msk.bf16.vlgmr.msra.gmra.mxu2 %vm477_vm0, %v4457_v24 }
  0xc3   : > { %1086 = vmatpush.bf16.msrb.mxu3 %v4714_v28  ;;  %1243 = vmatpush.bf16.msrb.mxu0 %v4800_v42  ;;  %v4867_v6 = vpop.f32.mrf.mxu0 }
  0xc4   : > { %1114 = vmatpush.bf16.msrb.mxu1 %v4714_v28  ;;  %1142 = vmatpush.bf16.msrb.mxu2 %v4633_v61  ;;  %v4847_v61 = vor.u32 %v3800_v57, %v3092_v56 }
  0xc6   : > { %v4871_v10 = vpop.f32.mrf.mxu1 }
  0xc7   : > { %1087 = vmatpush.bf16.msrb.mxu3 %v4734_v31  ;;  %1244 = vmatpush.bf16.msrb.mxu0 %v4822_v50 }
  0xc8   : > { %1115 = vmatpush.bf16.msrb.mxu1 %v4734_v31  ;;  %1143 = vmatpush.bf16.msrb.mxu2 %v4654_v1  ;;  %v3807_v1 = vld [vmem:[%s6044_s1 + $0x1d4] sm:$0xf] }
  0xc9   : > { %v4869_v9 = vor.u32 %v3807_v1, %v3126_v2  ;;  %v592_v20 = vpop.f32.mrf.mxu3 }
  0xcb   : > { %1088 = vmatpush.bf16.msrb.mxu3 %v4746_v32  ;;  %1245 = vmatpush.bf16.msrb.mxu0 %v4835_v54  ;;  %v665_v22 = vpop.f32.mrf.mxu0 }
  0xcc   : > { %1116 = vmatpush.bf16.msrb.mxu1 %v4746_v32  ;;  %1144 = vmatpush.bf16.msrb.mxu2 %v4666_v59  ;;  %v1134_v59 = vrot.slane %v1132_v62, 1 }
  0xce   : > { %v4883_v14 = vor.u32 %v1134_v59, %v1130_v5  ;;  %v623_v30 = vpop.f32.mrf.mxu1 }
  0xcf   : > { %1089 = vmatpush.bf16.msrb.mxu3 %v4758_v33  ;;  %1246 = vmatpush.bf16.msrb.mxu0 %v4847_v61  ;;  %v3823_v30 = vld [vmem:[%s6046_s3 + $0x74] sm:$0xf] }
  0xd0   : > { %1117 = vmatpush.bf16.msrb.mxu1 %v4758_v33  ;;  %1145 = vmatpush.bf16.msrb.mxu2 %v4678_v11  ;;  %v3118_v11 = vld [vmem:[%s6044_s1 + $0x1c8] sm:$0xf0] }
  0xd1   : > { %v4887_v18 = vor.u32 %v3805_v13, %v3118_v11  ;;  %v594_v25 = vpop.f32.mrf.mxu3 }
  0xd2   : > { %v3822_v25 = vld [vmem:[%s6046_s3 + $0x64] sm:$0xf0] }
  0xd3   : > { %1090 = vmatpush.bf16.msrb.mxu3 %v4770_v36  ;;  %1247 = vmatpush.bf16.msrb.mxu0 %v4865_v4 }
  0xd4   : > { %1118 = vmatpush.bf16.msrb.mxu1 %v4770_v36  ;;  %1146 = vmatpush.bf16.msrb.mxu2 %v4696_v12  ;;  %v4902_v12 = vadd.f32 %v592_v20, %v4782_v38 }
  0xd6   : > { %3065 = vmatmul.msk.bf16.vlgmr.msrb.gmra.mxu3 %vm477_vm0, %v4457_v24  ;;  %3130 = vmatmul.msk.bf16.vlgmr.msrb.gmra.mxu0 %vm477_vm0, %v4457_v24 }
  0xd7   : > { %1154 = vmatpush.bf16.msra.mxu3 %v4698_v21  ;;  %1298 = vmatpush.bf16.msra.mxu0 %v4784_v39  ;;  %v634_v21 = vpop.f32.mrf.mxu2 }
  0xd8   : > { %1255 = vmatpush.bf16.msra.mxu1 %v4869_v9  ;;  %1270 = vmatpush.bf16.msra.mxu2 %v4784_v39  ;;  %v4909_v23 = vadd.f32 %v634_v21, %v4780_v35 }
  0xd9   : > { %3067 = vmatmul.msk.bf16.vlgmr.msrb.gmra.mxu1 %vm477_vm0, %v4708_v27  ;;  %3068 = vmatmul.msk.bf16.vlgmr.msrb.gmra.mxu2 %vm477_vm0, %v4883_v14 }
  0xdb   : > { %1155 = vmatpush.bf16.msra.mxu3 %v4714_v28  ;;  %1299 = vmatpush.bf16.msra.mxu0 %v4800_v42  ;;  %v4925_v28 = vor.u32 %v3801_v7, %v3102_v8  ;;  %v728_v35 = vpop.f32.mrf.mxu0 }
  0xdc   : > { %1256 = vmatpush.bf16.msra.mxu1 %v4887_v18  ;;  %1271 = vmatpush.bf16.msra.mxu2 %v4800_v42 }
  0xde   : > { %v676_v38 = vpop.f32.mrf.mxu1 }
  0xdf   : > { %1156 = vmatpush.bf16.msra.mxu3 %v4734_v31  ;;  %1300 = vmatpush.bf16.msra.mxu0 %v4822_v50  ;;  %v636_v26 = vpop.f32.mrf.mxu2  ;;  %v4937_v31 = vor.u32 %v3799_v16, %v3094_v17  ;;  %v3268_v17 = vld [vmem:[%s6046_s3 + $0x60] sm:$0xf] }
  0xe0   : > { %1257 = vmatpush.bf16.msra.mxu1 %v4913_v29  ;;  %1272 = vmatpush.bf16.msra.mxu2 %v4822_v50  ;;  %v3821_v26 = vld [vmem:[%s6046_s3 + $0x64] sm:$0xf] }
  0xe3   : > { %1157 = vmatpush.bf16.msra.mxu3 %v4746_v32  ;;  %1301 = vmatpush.bf16.msra.mxu0 %v4835_v54  ;;  %v4949_v32 = vor.u32 %v3797_v37, %v3086_v34  ;;  %v730_v40 = vpop.f32.mrf.mxu0  ;;  %v3270_v37 = vld [vmem:[%s6046_s3 + $0x68] sm:$0xf0] }
  0xe4   : > { %1258 = vmatpush.bf16.msra.mxu1 %v4925_v28  ;;  %1273 = vmatpush.bf16.msra.mxu2 %v4835_v54  ;;  %v5046_v34 = vor.u32 %v3821_v26, %v3270_v37  ;;  %v3220_v26 = vld [vmem:[%s6046_s3] sm:$0xf]  ;;  %v3810_v37 = vld [vmem:[%s6046_s3 + $0x4] sm:$0xf0] }
  0xe7   : > { %1158 = vmatpush.bf16.msra.mxu3 %v4758_v33  ;;  %1302 = vmatpush.bf16.msra.mxu0 %v4847_v61  ;;  %v689_v33 = vpop.f32.mrf.mxu2 }
  0xe8   : > { %1259 = vmatpush.bf16.msra.mxu1 %v4937_v31  ;;  %1274 = vmatpush.bf16.msra.mxu2 %v4847_v61  ;;  %v690_v41 = vadd.f32 %v689_v33, %v4867_v6 }
  0xeb   : > { %1159 = vmatpush.bf16.msra.mxu3 %v4770_v36  ;;  %1303 = vmatpush.bf16.msra.mxu0 %v4865_v4  ;;  %v647_v36 = vpop.f32.mrf.mxu3 }
  0xec   : > { %1260 = vmatpush.bf16.msra.mxu1 %v4949_v32  ;;  %1275 = vmatpush.bf16.msra.mxu2 %v4865_v4  ;;  %v4970_v43 = vadd.f32 %v647_v36, %v4871_v10  ;;  %v3262_v36 = vld [vmem:[%s6046_s3 + $0x58] sm:$0xf0] }
  0xee   : > { %3069 = vmatmul.msk.bf16.vlgmr.msra.gmra.mxu3 %vm477_vm0, %v4883_v14  ;;  %3134 = vmatmul.msk.bf16.vlgmr.msra.gmra.mxu0 %vm477_vm0, %v4883_v14 }
  0xef   : > { %1283 = vmatpush.bf16.msrb.mxu3 %v4869_v9  ;;  %3131 = vmatmul.msk.bf16.vlgmr.msra.gmra.mxu1 %vm477_vm0, %v4457_v24  ;;  %v1325_v24 = vunpack.c.l.b16 %v4418_v15  ;;  %v691_v45 = vpop.f32.mrf.mxu2 }
  0xf0   : > { %1311 = vmatpush.bf16.msrb.mxu1 %v4869_v9  ;;  %1339 = vmatpush.bf16.msrb.mxu2 %v4784_v39  ;;  %v678_v39 = vpop.f32.mrf.mxu1  ;;  %v3817_v45 = vld [vmem:[%s6046_s3 + $0x44] sm:$0xf] }
  0xf1   : > { %3132 = vmatmul.msk.bf16.vlgmr.msra.gmra.mxu2 %vm477_vm0, %v4708_v27  ;;  %v1326_v44 = vpack.c.b16 %v1325_v24, %v1325_v24  ;;  %v3818_v39 = vld [vmem:[%s6046_s3 + $0x44] sm:$0xf0] }
  0xf3   : > { %1284 = vmatpush.bf16.msrb.mxu3 %v4887_v18  ;;  %v649_v46 = vpop.f32.mrf.mxu3  ;;  %v1330_v47 = vshll.u32 %v1326_v44, 16  ;;  %v1328_v15 = vshrl.u32 %v1326_v44, 16  ;;  %v853_v49 = vpop.f32.mrf.mxu0 }
  0xf4   : > { %1312 = vmatpush.bf16.msrb.mxu1 %v4887_v18  ;;  %1340 = vmatpush.bf16.msrb.mxu2 %v4800_v42  ;;  %v3254_v46 = vld [vmem:[%s6046_s3 + $0x48] sm:$0xf0] }
  0xf5   : > { %v1332_v42 = vrot.slane %v1330_v47, 1 }
  0xf7   : > { %1285 = vmatpush.bf16.msrb.mxu3 %v4913_v29  ;;  %v1333_v52 = vor.u32 %v1332_v42, %v1328_v15  ;;  %v5086_v42 = vor.u32 %v3817_v45, %v3254_v46  ;;  %v3198_v45 = vld [vmem:[%s6046_s3 + $0xd8] sm:$0xf0]  ;;  %v3188_v46 = vld [vmem:[%s6046_s3 + $0xc0] sm:$0xf] }
  0xf8   : > { %1313 = vmatpush.bf16.msrb.mxu1 %v4913_v29  ;;  %1341 = vmatpush.bf16.msrb.mxu2 %v4822_v50  ;;  %v741_v51 = vpop.f32.mrf.mxu1  ;;  %v870_v50 = vadd.f32 %v853_v49, %v4816_v48  ;;  %v3244_v49 = vld [vmem:[%s6046_s3 + $0x30] sm:$0xf] }
  0xfb   : > { %1286 = vmatpush.bf16.msrb.mxu3 %v4925_v28  ;;  %v855_v56 = vpop.f32.mrf.mxu0 }
  0xfc   : > { %1314 = vmatpush.bf16.msrb.mxu1 %v4925_v28  ;;  %1342 = vmatpush.bf16.msrb.mxu2 %v4835_v54  ;;  %v754_v53 = vpop.f32.mrf.mxu2  ;;  %v702_v54 = vpop.f32.mrf.mxu3 }
  0xfd   : > { %v755_v48 = vadd.f32 %v754_v53, %v728_v35  ;;  %v703_v60 = vadd.f32 %v702_v54, %v676_v38  ;;  %v3820_v35 = vld [vmem:[%s6046_s3 + $0x54] sm:$0xf0]  ;;  %v3819_v38 = vld [vmem:[%s6046_s3 + $0x54] sm:$0xf]  ;;  %v3246_v53 = vld [vmem:[%s6046_s3 + $0x38] sm:$0xf0] }
  0xff   : > { %1287 = vmatpush.bf16.msrb.mxu3 %v4937_v31 }
 0x100   : > { %1315 = vmatpush.bf16.msrb.mxu1 %v4937_v31  ;;  %1343 = vmatpush.bf16.msrb.mxu2 %v4847_v61  ;;  %v743_v55 = vpop.f32.mrf.mxu1 }
 0x103   : > { %1288 = vmatpush.bf16.msrb.mxu3 %v4949_v32 }
 0x104   : > { %1316 = vmatpush.bf16.msrb.mxu1 %v4949_v32  ;;  %1344 = vmatpush.bf16.msrb.mxu2 %v4865_v4  ;;  %v756_v57 = vpop.f32.mrf.mxu2  ;;  %v704_v58 = vpop.f32.mrf.mxu3 }
 0x105   : > { %v3236_v58 = vld [vmem:[%s6046_s3 + $0x20] sm:$0xf] }
 0x106   : > { %3133 = vmatmul.msk.bf16.vlgmr.msrb.gmra.mxu3 %vm477_vm0, %v4708_v27 }
 0x107   : > { %1352 = vmatpush.bf16.msra.mxu3 %v4869_v9  ;;  %3135 = vmatmul.msk.bf16.vlgmr.msrb.gmra.mxu1 %vm477_vm0, %v4883_v14 }
 0x108   : > { %3136 = vmatmul.msk.bf16.vlgmr.msrb.gmra.mxu2 %vm477_vm0, %v1333_v52 }
 0x10b   : > { %1353 = vmatpush.bf16.msra.mxu3 %v4887_v18  ;;  %v909_v62 = vpop.f32.mrf.mxu0 }
 0x10c   : > { %v926_v63 = vadd.f32 %v909_v62, %v690_v41  ;;  %v5064_v41 = vor.u32 %v3819_v38, %v3262_v36  ;;  %v3222_v38 = vld [vmem:[%s6046_s3 + $0x8] sm:$0xf0]  ;;  %v3196_v36 = vld [vmem:[%s6046_s3 + $0xd0] sm:$0xf] }
 0x10e   : > { %v866_v27 = vpop.f32.mrf.mxu1 }
 0x10f   : > { %1354 = vmatpush.bf16.msra.mxu3 %v4913_v29  ;;  %v871_v61 = vadd.f32 %v866_v27, %v4902_v12  ;;  %v3824_v29 = vld [vmem:[%s6046_s3 + $0x74] sm:$0xf0]  ;;  %v3814_v27 = vld [vmem:[%s6046_s3 + $0x24] sm:$0xf0] }
 0x110   : > { %v5121_v62 = vor.u32 %v3814_v27, %v3236_v58 }
 0x111   : > { %v767_v2 = vpop.f32.mrf.mxu3 }
 0x112   : > { %v768_v4 = vadd.f32 %v767_v2, %v741_v51  ;;  %v3816_v51 = vld [vmem:[%s6046_s3 + $0x34] sm:$0xf0] }
 0x113   : > { %1355 = vmatpush.bf16.msra.mxu3 %v4925_v28  ;;  %v911_v59 = vpop.f32.mrf.mxu0  ;;  %v3278_v28 = vld [vmem:[%s6046_s3 + $0x78] sm:$0xf0]  ;;  %v5105_v55 = vor.u32 %v3816_v51, %v3244_v49  ;;  %v3840_v2 = vld [vmem:[%s6046_s3 + $0xf4] sm:$0xf0] }
 0x114   : > { %v881_v0 = vpop.f32.mrf.mxu2  ;;  %v5028_v16 = vor.u32 %v3823_v30, %v3278_v28  ;;  %v3837_v28 = vld [vmem:[%s6046_s3 + $0xe4] sm:$0xf] }
 0x115   : > { %v5003_v1 = vadd.f32 %v881_v0, %v4909_v23  ;;  %v3276_v23 = vld [vmem:[%s6046_s3 + $0x70] sm:$0xf] }
 0x116   : > { %v868_v5 = vpop.f32.mrf.mxu1  ;;  %v5023_v8 = vor.u32 %v3824_v29, %v3276_v23  ;;  %v3212_v0 = vld [vmem:[%s6046_s3 + $0xf0] sm:$0xf]  ;;  %v3204_v23 = vld [vmem:[%s6046_s3 + $0xe0] sm:$0xf]  ;;  %v3838_v29 = vld [vmem:[%s6046_s3 + $0xe4] sm:$0xf0] }
 0x117   : > { %1356 = vmatpush.bf16.msra.mxu3 %v4937_v31  ;;  %v5041_v31 = vor.u32 %v3822_v25, %v3268_v17  ;;  %v5134_v59 = vor.u32 %v3840_v2, %v3212_v0  ;;  %v3206_v17 = vld [vmem:[%s6046_s3 + $0xe8] sm:$0xf0] }
 0x118   : > { %1600 = vmatpush.bf16.msra.mxu2 %v5023_v8  ;;  %v5179_v25 = vor.u32 %v3837_v28, %v3206_v17  ;;  %v3166_v17 = vld [vmem:[%s6046_s3 + $0x98] sm:$0xf0] }
 0x119   : > { %v769_v9 = vpop.f32.mrf.mxu3  ;;  %1494 = vmatpush.bf16.msrb.mxu0 %v5134_v59 }
 0x11a   : > { %v3214_v9 = vld [vmem:[%s6046_s3 + $0xf8] sm:$0xf0] }
 0x11b   : > { %1357 = vmatpush.bf16.msra.mxu3 %v4949_v32  ;;  %v3260_v32 = vld [vmem:[%s6046_s3 + $0x50] sm:$0xf] }
 0x11c   : > { %v883_v6 = vpop.f32.mrf.mxu2  ;;  %1601 = vmatpush.bf16.msra.mxu2 %v5041_v31  ;;  %v5058_v33 = vor.u32 %v3820_v35, %v3260_v32  ;;  %v3809_v32 = vld [vmem:[%s6046_s3 + $0x4] sm:$0xf]  ;;  %v5192_v35 = vor.u32 %v3810_v37, %v3220_v26  ;;  %v3156_v26 = vld [vmem:[%s6046_s3 + $0x80] sm:$0xf]  ;;  %v3826_v37 = vld [vmem:[%s6046_s3 + $0x84] sm:$0xf0] }
 0x11d   : > { %v3839_v6 = vld [vmem:[%s6046_s3 + $0xf4] sm:$0xf] }
 0x11e   : > { %3137 = vmatmul.msk.bf16.vlgmr.msra.gmra.mxu3 %vm477_vm0, %v1333_v52 }
 0x11f   : > { %1613 = vmatpush.bf16.msrb.mxu3 %v5028_v16 }
 0x120   : > { %1602 = vmatpush.bf16.msra.mxu2 %v5058_v33 }
 0x123   : > { %v1051_v11 = vpop.f32.mrf.mxu0  ;;  %1614 = vmatpush.bf16.msrb.mxu3 %v5046_v34 }
 0x124   : > { %v5007_v14 = vadd.f32 %v1051_v11, %v870_v50  ;;  %v3815_v50 = vld [vmem:[%s6046_s3 + $0x34] sm:$0xf]  ;;  %v5143_v11 = vor.u32 %v3839_v6, %v3214_v9 }
 0x125   : > { %v5108_v56 = vor.u32 %v3815_v50, %v3246_v53  ;;  %v3834_v50 = vld [vmem:[%s6046_s3 + $0xc4] sm:$0xf0]  ;;  %v3190_v53 = vld [vmem:[%s6046_s3 + $0xc8] sm:$0xf0] }
 0x126   : > { %v922_v10 = vpop.f32.mrf.mxu1  ;;  %1507 = vmatpush.bf16.msra.mxu1 %v5143_v11  ;;  %v5234_v58 = vor.u32 %v3834_v50, %v3188_v46 }
 0x127   : > { %v5005_v13 = vadd.f32 %v922_v10, %v703_v60  ;;  %1615 = vmatpush.bf16.msrb.mxu3 %v5064_v41 }
 0x129   : > { %v894_v18 = vpop.f32.mrf.mxu3 }
 0x12a   : > { %v5010_v3 = vadd.f32 %v894_v18, %v4970_v43  ;;  %v3252_v43 = vld [vmem:[%s6046_s3 + $0x40] sm:$0xf]  ;;  %v3228_v18 = vld [vmem:[%s6046_s3 + $0x10] sm:$0xf]  ;;  %1508 = vmatpush.bf16.msra.mxu1 %v5179_v25 }
 0x12b   : > { %v1053_v21 = vpop.f32.mrf.mxu0  ;;  %v5083_v15 = vor.u32 %v3818_v39, %v3252_v43  ;;  %1616 = vmatpush.bf16.msrb.mxu3 %v5086_v42  ;;  %v5204_v43 = vor.u32 %v3809_v32, %v3222_v38  ;;  %v3157_v32 = vor.u32 %v3826_v37, %v3156_v26  ;;  %v3158_v38 = vld [vmem:[%s6046_s3 + $0x88] sm:$0xf0] }
 0x12c   : > { %v950_v19 = vpop.f32.mrf.mxu2 }
 0x12d   : > { %v5012_v20 = vadd.f32 %v950_v19, %v755_v48  ;;  %1603 = vmatpush.bf16.msra.mxu2 %v5083_v15  ;;  %v3812_v19 = vld [vmem:[%s6046_s3 + $0x14] sm:$0xf0] }
 0x12e   : > { %v924_v12 = vpop.f32.mrf.mxu1  ;;  %v5157_v21 = vor.u32 %v3812_v19, %v3228_v18  ;;  %v3829_v18 = vld [vmem:[%s6046_s3 + $0xa4] sm:$0xf]  ;;  %v3174_v19 = vld [vmem:[%s6046_s3 + $0xa8] sm:$0xf0] }
 0x12f   : > { %1617 = vmatpush.bf16.msrb.mxu3 %v5108_v56  ;;  %v3811_v12 = vld [vmem:[%s6046_s3 + $0x14] sm:$0xf] }
 0x131   : > { %v896_v22 = vpop.f32.mrf.mxu3  ;;  %1604 = vmatpush.bf16.msra.mxu2 %v5105_v55 }
 0x132   : > { %v3230_v22 = vld [vmem:[%s6046_s3 + $0x18] sm:$0xf0] }
 0x133   : > { %v5168_v30 = vor.u32 %v3811_v12, %v3230_v22 }
 0x134   : > { %v952_v7 = vpop.f32.mrf.mxu2 }
 0x135   : > { %1605 = vmatpush.bf16.msra.mxu2 %v5121_v62  ;;  %v5170_v7 = vor.u32 %v3838_v29, %v3204_v23  ;;  %v3164_v23 = vld [vmem:[%s6046_s3 + $0x90] sm:$0xf]  ;;  %v3827_v29 = vld [vmem:[%s6046_s3 + $0x94] sm:$0xf] }
 0x137   : > { %1495 = vmatpush.bf16.msrb.mxu0 %v5170_v7 }
 0x139   : > { %1606 = vmatpush.bf16.msra.mxu2 %v5157_v21 }
 0x13b   : > { %v1107_v44 = vpop.f32.mrf.mxu0 }
 0x13c   : > { %v5080_v47 = vadd.f32 %v1107_v44, %v926_v63  ;;  %v3238_v63 = vld [vmem:[%s6046_s3 + $0x28] sm:$0xf0]  ;;  %v3835_v44 = vld [vmem:[%s6046_s3 + $0xd4] sm:$0xf] }
 0x13d   : > { %v5217_v51 = vor.u32 %v3835_v44, %v3198_v45  ;;  %1607 = vmatpush.bf16.msra.mxu2 %v5192_v35 }
 0x13e   : > { %v1064_v40 = vpop.f32.mrf.mxu1 }
 0x13f   : > { %v5072_v24 = vadd.f32 %v1064_v40, %v871_v61  ;;  %v3813_v61 = vld [vmem:[%s6046_s3 + $0x24] sm:$0xf]  ;;  %v3836_v40 = vld [vmem:[%s6046_s3 + $0xd4] sm:$0xf0]  ;;  %1509 = vmatpush.bf16.msra.mxu1 %v5217_v51 }
 0x140   : > { %v5132_v5 = vor.u32 %v3813_v61, %v3238_v63  ;;  %v5206_v39 = vor.u32 %v3836_v40, %v3196_v36  ;;  %v3832_v61 = vld [vmem:[%s6046_s3 + $0xb4] sm:$0xf0]  ;;  %v3831_v63 = vld [vmem:[%s6046_s3 + $0xb4] sm:$0xf] }
 0x141   : > { %v963_v52 = vpop.f32.mrf.mxu3  ;;  %1663 = vmatpush.bf16.msrb.mxu2 %v5023_v8  ;;  %v3182_v8 = vld [vmem:[%s6046_s3 + $0xb8] sm:$0xf0] }
 0x142   : > { %v5100_v54 = vadd.f32 %v963_v52, %v768_v4  ;;  %1618 = vmatpush.bf16.msrb.mxu3 %v5132_v5  ;;  %v3833_v52 = vld [vmem:[%s6046_s3 + $0xc4] sm:$0xf]  ;;  %1496 = vmatpush.bf16.msrb.mxu0 %v5206_v39 }
 0x143   : > { %v1109_v57 = vpop.f32.mrf.mxu0  ;;  %v5238_v27 = vor.u32 %v3833_v52, %v3190_v53  ;;  %v3984_v52 = vld [vmem:[%s6045_s2] ss:$0 sm:$0xff] }
 0x144   : > { %v5102_v48 = vpop.f32.mrf.mxu2 }
 0x145   : > { %1510 = vmatpush.bf16.msra.mxu1 %v5238_v27  ;;  %1664 = vmatpush.bf16.msrb.mxu2 %v5041_v31  ;;  %v3830_v31 = vld [vmem:[%s6046_s3 + $0xa4] sm:$0xf0] }
 0x146   : > { %v1066_v60 = vpop.f32.mrf.mxu1  ;;  %1619 = vmatpush.bf16.msrb.mxu3 %v5168_v30  ;;  %1497 = vmatpush.bf16.msrb.mxu0 %v5234_v58 }
 0x149   : > { %v965_v4 = vpop.f32.mrf.mxu3  ;;  %1665 = vmatpush.bf16.msrb.mxu2 %v5058_v33  ;;  %v3177_v33 = vor.u32 %v3829_v18, %v3174_v19  ;;  %v3852_v18 = vld [vmem:[%s6046_s3 + $0x154] sm:$0xf0]  ;;  %v3342_v19 = vld [vmem:[%s6046_s3 + $0x158] sm:$0xf0] }
 0x14a   : > { %1620 = vmatpush.bf16.msrb.mxu3 %v5204_v43  ;;  %v5262_v4 = vor.u32 %v3831_v63, %v3182_v8  ;;  %v3348_v8 = vld [vmem:[%s6046_s3 + $0x160] sm:$0xf] }
 0x14c   : > { %v1081_v10 = vpop.f32.mrf.mxu2  ;;  %1511 = vmatpush.bf16.msra.mxu1 %v5262_v4 }
 0x14d   : > { %v3172_v10 = vld [vmem:[%s6046_s3 + $0xa0] sm:$0xf]  ;;  %1666 = vmatpush.bf16.msrb.mxu2 %v5083_v15  ;;  %v3169_v15 = vor.u32 %v3827_v29, %v3166_v17  ;;  %v3334_v29 = vld [vmem:[%s6046_s3 + $0x148] sm:$0xf0] }
 0x14e   : > { %1676 = vmatpush.bf16.msra.mxu3 %v5028_v16 }
 0x150   : > { %1512 = vmatpush.bf16.msra.mxu1 %v3177_v33 }
 0x151   : > { %1667 = vmatpush.bf16.msrb.mxu2 %v5105_v55 }
 0x152   : > { %1677 = vmatpush.bf16.msra.mxu3 %v5046_v34  ;;  %v3173_v34 = vor.u32 %v3830_v31, %v3172_v10  ;;  %v3340_v31 = vld [vmem:[%s6046_s3 + $0x150] sm:$0xf] }
 0x153   : > { %v1249_v57 = vpop.f32.mrf.mxu0 }
 0x154   : > { %1513 = vmatpush.bf16.msra.mxu1 %v3169_v15  ;;  %v1266_v40 = vadd.f32 %v1249_v57, %v5007_v14  ;;  %v3358_v57 = vld [vmem:[%s6046_s3 + $0x178] sm:$0xf0] }
 0x155   : > { %1668 = vmatpush.bf16.msrb.mxu2 %v5121_v62 }
 0x156   : > { %v1120_v49 = vpop.f32.mrf.mxu1  ;;  %1678 = vmatpush.bf16.msra.mxu3 %v5064_v41  ;;  %v3828_v41 = vld [vmem:[%s6046_s3 + $0x94] sm:$0xf0] }
 0x157   : > { %v5229_v60 = vadd.f32 %v1120_v49, %v5005_v13  ;;  %v3180_v13 = vld [vmem:[%s6046_s3 + $0xb0] sm:$0xf]  ;;  %v3165_v28 = vor.u32 %v3828_v41, %v3164_v23  ;;  %v3850_v23 = vld [vmem:[%s6046_s3 + $0x144] sm:$0xf0]  ;;  %v3849_v41 = vld [vmem:[%s6046_s3 + $0x144] sm:$0xf] }
 0x158   : > { %v5256_v16 = vor.u32 %v3832_v61, %v3180_v13 }
 0x159   : > { %v5253_v0 = vpop.f32.mrf.mxu3  ;;  %1669 = vmatpush.bf16.msrb.mxu2 %v5157_v21 }
 0x15a   : > { %1498 = vmatpush.bf16.msrb.mxu0 %v5256_v16  ;;  %1679 = vmatpush.bf16.msra.mxu3 %v5086_v42  ;;  %v3825_v42 = vld [vmem:[%s6046_s3 + $0x84] sm:$0xf] }
 0x15b   : > { %v1251_v9 = vpop.f32.mrf.mxu0  ;;  %v3161_v55 = vor.u32 %v3825_v42, %v3158_v38  ;;  %v3324_v38 = vld [vmem:[%s6046_s3 + $0x130] sm:$0xf] }
 0x15c   : > { %v5258_v2 = vpop.f32.mrf.mxu2 }
 0x15d   : > { %1514 = vmatpush.bf16.msra.mxu1 %v3161_v55  ;;  %1670 = vmatpush.bf16.msrb.mxu2 %v5192_v35 }
 0x15e   : > { %v1122_v6 = vpop.f32.mrf.mxu1  ;;  %1499 = vmatpush.bf16.msrb.mxu0 %v3173_v34  ;;  %1680 = vmatpush.bf16.msra.mxu3 %v5108_v56 }
 0x15f   : > { %v3350_v6 = vld [vmem:[%s6046_s3 + $0x168] sm:$0xf0] }
 0x161   : > { %v1094_v12 = vpop.f32.mrf.mxu3  ;;  %1650 = vmatpush.bf16.msrb.mxu1 %v5143_v11 }
 0x162   : > { %1500 = vmatpush.bf16.msrb.mxu0 %v3165_v28  ;;  %1681 = vmatpush.bf16.msra.mxu3 %v5132_v5 }
 0x164   : > { %v1150_v22 = vpop.f32.mrf.mxu2 }
 0x165   : > { %1651 = vmatpush.bf16.msrb.mxu1 %v5179_v25  ;;  %v1097_v25 = vadd.f32 %v5253_v0, %v5010_v3  ;;  %v3332_v22 = vld [vmem:[%s6046_s3 + $0x140] sm:$0xf] }
 0x166   : > { %1501 = vmatpush.bf16.msrb.mxu0 %v3157_v32  ;;  %1682 = vmatpush.bf16.msra.mxu3 %v5168_v30  ;;  %v5416_v26 = vor.u32 %v3850_v23, %v3332_v22  ;;  %v3420_v22 = vld [vmem:[%s6046_s3 + $0x1d0] sm:$0xf]  ;;  %v3868_v23 = vld [vmem:[%s6046_s3 + $0x1d4] sm:$0xf0] }
 0x169   : > { %1652 = vmatpush.bf16.msrb.mxu1 %v5217_v51 }
 0x16a   : > { %1637 = vmatpush.bf16.msra.mxu0 %v5134_v59  ;;  %1683 = vmatpush.bf16.msra.mxu3 %v5204_v43 }
 0x16b   : > { %v1305_v45 = vpop.f32.mrf.mxu0 }
 0x16c   : > { %v1262_v36 = vpop.f32.mrf.mxu1  ;;  %v5330_v11 = vadd.f32 %v1305_v45, %v5080_v47  ;;  %v3316_v45 = vld [vmem:[%s6046_s3 + $0x120] sm:$0xf] }
 0x16d   : > { %v1267_v44 = vadd.f32 %v1262_v36, %v5072_v24  ;;  %1653 = vmatpush.bf16.msrb.mxu1 %v5238_v27 }
 0x16e   : > { %1638 = vmatpush.bf16.msra.mxu0 %v5170_v7  ;;  %v1096_v7 = vadd.f32 %v5102_v48, %v5003_v1  ;;  %v3356_v1 = vld [vmem:[%s6046_s3 + $0x170] sm:$0xf]  ;;  %v3856_v48 = vld [vmem:[%s6046_s3 + $0x174] sm:$0xf0] }
 0x16f   : > { %v1366_v56 = vmax.f32 %v1266_v40, %v1267_v44  ;;  %v5356_v61 = vor.u32 %v3856_v48, %v3356_v1  ;;  %v3436_v1 = vld [vmem:[%s6046_s3 + $0x1f0] sm:$0xf]  ;;  %v3871_v48 = vld [vmem:[%s6046_s3 + $0x1f4] sm:$0xf] }
 0x171   : > { %v5315_v46 = vpop.f32.mrf.mxu3  ;;  %1654 = vmatpush.bf16.msrb.mxu1 %v5262_v4  ;;  %v3853_v4 = vld [vmem:[%s6046_s3 + $0x164] sm:$0xf] }
 0x172   : > { %1639 = vmatpush.bf16.msra.mxu0 %v5206_v39  ;;  %v5380_v10 = vor.u32 %v3853_v4, %v3350_v6  ;;  %v1166_v17 = vadd.f32 %v5315_v46, %v5100_v54  ;;  %v3847_v54 = vld [vmem:[%s6046_s3 + $0x134] sm:$0xf]  ;;  %v3845_v46 = vld [vmem:[%s6046_s3 + $0x124] sm:$0xf]  ;;  %v3430_v4 = vld [vmem:[%s6046_s3 + $0x1e8] sm:$0xf0] }
 0x173   : > { %v1307_v24 = vpop.f32.mrf.mxu0 }
 0x174   : > { %v1277_v49 = vpop.f32.mrf.mxu2  ;;  %v1264_v14 = vpop.f32.mrf.mxu1 }
 0x175   : > { %1655 = vmatpush.bf16.msrb.mxu1 %v3177_v33  ;;  %v1294_v43 = vadd.f32 %v1277_v49, %v1096_v7  ;;  %v5396_v33 = vor.u32 %v3852_v18, %v3340_v31  ;;  %v3318_v49 = vld [vmem:[%s6046_s3 + $0x128] sm:$0xf0]  ;;  %v3310_v7 = vld [vmem:[%s6046_s3 + $0x118] sm:$0xf0] }
 0x176   : > { %1640 = vmatpush.bf16.msra.mxu0 %v5234_v58 }
 0x179   : > { %v1163_v62 = vpop.f32.mrf.mxu3  ;;  %1656 = vmatpush.bf16.msrb.mxu1 %v3169_v15 }
 0x17a   : > { %1641 = vmatpush.bf16.msra.mxu0 %v5256_v16  ;;  %v3854_v16 = vld [vmem:[%s6046_s3 + $0x164] sm:$0xf0] }
 0x17b   : > { %v5378_v9 = vor.u32 %v3854_v16, %v3348_v8  ;;  %v3869_v16 = vld [vmem:[%s6046_s3 + $0x1e4] sm:$0xf] }
 0x17c   : > { %v1279_v5 = vpop.f32.mrf.mxu2 }
 0x17d   : > { %1657 = vmatpush.bf16.msrb.mxu1 %v3161_v55 }
 0x17e   : > { %1642 = vmatpush.bf16.msra.mxu0 %v3173_v34  ;;  %v3851_v34 = vld [vmem:[%s6046_s3 + $0x154] sm:$0xf] }
 0x17f   : > { %v5398_v12 = vor.u32 %v3851_v34, %v3342_v19  ;;  %v5539_v34 = vor.u32 %v3869_v16, %v3430_v4  ;;  %v3883_v16 = vld [vmem:[%s6046_s3 + $0x254] sm:$0xf]  ;;  %v3502_v4 = vld [vmem:[%s6046_s3 + $0x258] sm:$0xf0] }
 0x182   : > { %1643 = vmatpush.bf16.msra.mxu0 %v3165_v28  ;;  %v1165_v28 = vadd.f32 %v5258_v2, %v5012_v20  ;;  %v3848_v20 = vld [vmem:[%s6046_s3 + $0x134] sm:$0xf0]  ;;  %v3326_v2 = vld [vmem:[%s6046_s3 + $0x138] sm:$0xf0] }
 0x183   : > { %v5436_v40 = vor.u32 %v3848_v20, %v3324_v38  ;;  %v5438_v44 = vor.u32 %v3847_v54, %v3326_v2  ;;  %v3404_v54 = vld [vmem:[%s6046_s3 + $0x1b0] sm:$0xf]  ;;  %v3864_v2 = vld [vmem:[%s6046_s3 + $0x1b4] sm:$0xf0] }
 0x184   : > { %v1318_v59 = vpop.f32.mrf.mxu1 }
 0x185   : > { %v5333_v21 = vadd.f32 %v1318_v59, %v5229_v60  ;;  %v3855_v60 = vld [vmem:[%s6046_s3 + $0x174] sm:$0xf]  ;;  %v5456_v59 = vor.u32 %v3845_v46, %v3318_v49  ;;  %v3861_v46 = vld [vmem:[%s6046_s3 + $0x1a4] sm:$0xf]  ;;  %v3398_v49 = vld [vmem:[%s6046_s3 + $0x1a8] sm:$0xf0] }
 0x186   : > { %1644 = vmatpush.bf16.msra.mxu0 %v3157_v32  ;;  %v5358_v63 = vor.u32 %v3855_v60, %v3358_v57  ;;  %v5420_v32 = vor.u32 %v3849_v41, %v3334_v29  ;;  %v3438_v60 = vld [vmem:[%s6046_s3 + $0x1f8] sm:$0xf0] }
 0x187   : > { %v1375_v30 = vmax.f32 %v5330_v11, %v5333_v21  ;;  %v3308_v11 = vld [vmem:[%s6046_s3 + $0x110] sm:$0xf]  ;;  %v3844_v21 = vld [vmem:[%s6046_s3 + $0x114] sm:$0xf0] }
 0x189   : > { %v1290_v35 = vpop.f32.mrf.mxu3 }
 0x18a   : > { %v1295_v47 = vadd.f32 %v1290_v35, %v1097_v25 }
 0x18b   : > { %v1346_v39 = vpop.f32.mrf.mxu2 }
 0x18c   : > { %v1320_v51 = vpop.f32.mrf.mxu1  ;;  %v1367_v50 = vmax.f32 %v1294_v43, %v1295_v47  ;;  %v1363_v37 = vadd.f32 %v1346_v39, %v1165_v28  ;;  %v5473_v43 = vor.u32 %v3844_v21, %v3308_v11  ;;  %v3300_v39 = vld [vmem:[%s6046_s3 + $0x100] sm:$0xf]  ;;  %v3390_v11 = vld [vmem:[%s6046_s3 + $0x198] sm:$0xf0] }
 0x18d   : > { %v3842_v51 = vld [vmem:[%s6046_s3 + $0x104] sm:$0xf0] }
 0x18e   : > { %v1368_v53 = vmax.f32 %v1366_v56, %v1367_v50  ;;  %v3846_v56 = vld [vmem:[%s6046_s3 + $0x124] sm:$0xf0] }
 0x18f   : > { %v5454_v5 = vor.u32 %v3846_v56, %v3316_v45  ;;  %v3396_v45 = vld [vmem:[%s6046_s3 + $0x1a0] sm:$0xf]  ;;  %v3862_v56 = vld [vmem:[%s6046_s3 + $0x1a4] sm:$0xf0] }
 0x190   : > { %v1372_v3 = vadd.f32 %v3984_v52, %v1368_v53  ;;  %v3302_v53 = vld [vmem:[%s6046_s3 + $0x108] sm:$0xf0] }
 0x191   : > { %v1292_v58 = vpop.f32.mrf.mxu3 }
 0x192   : > { %v1373_v27 = vmax.f32 %v1372_v3, 0.0  ;;  %v3872_v3 = vld [vmem:[%s6046_s3 + $0x1f4] sm:$0xf0]  ;;  %v5507_v58 = vor.u32 %v3842_v51, %v3300_v39  ;;  %v3887_v51 = vld [vmem:[%s6046_s3 + $0x274] sm:$0xf] }
 0x193   : > { %v1348_v13 = vpop.f32.mrf.mxu2  ;;  %v5513_v8 = vor.u32 %v3872_v3, %v3436_v1  ;;  %v3888_v39 = vld [vmem:[%s6046_s3 + $0x274] sm:$0xf0] }
 0x194   : > { %v5363_v0 = vpack.c.bf16 %v1373_v27, %v1373_v27 }
 0x196   : > { %1608 = vmatmul.bf16.vlgmr.msra.gmra.mxu2 %v5363_v0  ;;  %1621 = vmatmul.bf16.vlgmr.msrb.gmra.mxu3 %v5363_v0  ;;  %v1627_v35 = vunpack.c.l.b16 %v5363_v0  ;;  %v5515_v0 = vor.u32 %v3871_v48, %v3438_v60  ;;  %v3508_v48 = vld [vmem:[%s6046_s3 + $0x260] sm:$0xf]  ;;  %v3886_v60 = vld [vmem:[%s6046_s3 + $0x264] sm:$0xf0] }
 0x197   : > { %1825 = vmatpush.bf16.msra.mxu2 %v5356_v61  ;;  %1838 = vmatpush.bf16.msrb.mxu3 %v5358_v63 }
 0x198   : > { %v5501_v57 = vpack.c.b16 %v1627_v35, %v1627_v35  ;;  %v3857_v35 = vld [vmem:[%s6046_s3 + $0x184] sm:$0xf] }
 0x19a   : > { %v1632_v6 = vshll.u32 %v5501_v57, 16 }
 0x19b   : > { %1826 = vmatpush.bf16.msra.mxu2 %v5378_v9  ;;  %1839 = vmatpush.bf16.msrb.mxu3 %v5380_v10 }
 0x19f   : > { %1827 = vmatpush.bf16.msra.mxu2 %v5396_v33  ;;  %1840 = vmatpush.bf16.msrb.mxu3 %v5398_v12 }
 0x1a1   : > { %v1359_v15 = vpop.f32.mrf.mxu3 }
 0x1a2   : > { %v1364_v42 = vadd.f32 %v1359_v15, %v1166_v17  ;;  %v5563_v17 = vor.u32 %v3868_v23, %v3420_v22  ;;  %v3484_v23 = vld [vmem:[%s6046_s3 + $0x230] sm:$0xf] }
 0x1a3   : > { %1828 = vmatpush.bf16.msra.mxu2 %v5416_v26  ;;  %1841 = vmatpush.bf16.msrb.mxu3 %v5420_v32 }
 0x1a4   : > { %v1376_v55 = vmax.f32 %v1363_v37, %v1364_v42  ;;  %v3412_v37 = vld [vmem:[%s6046_s3 + $0x1c0] sm:$0xf]  ;;  %v3866_v42 = vld [vmem:[%s6046_s3 + $0x1c4] sm:$0xf0] }
 0x1a5   : > { %v5585_v38 = vor.u32 %v3866_v42, %v3412_v37  ;;  %v3878_v37 = vld [vmem:[%s6046_s3 + $0x224] sm:$0xf0]  ;;  %v3877_v42 = vld [vmem:[%s6046_s3 + $0x224] sm:$0xf] }
 0x1a6   : > { %v1377_v36 = vmax.f32 %v1375_v30, %v1376_v55  ;;  %v3843_v30 = vld [vmem:[%s6046_s3 + $0x114] sm:$0xf] }
 0x1a7   : > { %1829 = vmatpush.bf16.msra.mxu2 %v5436_v40  ;;  %1842 = vmatpush.bf16.msrb.mxu3 %v5438_v44  ;;  %v5475_v47 = vor.u32 %v3843_v30, %v3310_v7  ;;  %v3863_v55 = vld [vmem:[%s6046_s3 + $0x1b4] sm:$0xf]  ;;  %v3380_v7 = vld [vmem:[%s6046_s3 + $0x180] sm:$0xf] }
 0x1a8   : > { %v1378_v14 = vadd.f32 %v3984_v52, %v1377_v36  ;;  %v3841_v52 = vld [vmem:[%s6046_s3 + $0x104] sm:$0xf]  ;;  %v3406_v36 = vld [vmem:[%s6046_s3 + $0x1b8] sm:$0xf0] }
 0x1a9   : > { %v1361_v24 = vpop.f32.mrf.mxu3  ;;  %v5509_v27 = vor.u32 %v3841_v52, %v3302_v53 }
 0x1aa   : > { %v1379_v62 = vmax.f32 %v1378_v14, 0.0  ;;  %v5625_v14 = vor.u32 %v3862_v56, %v3396_v45  ;;  %v5627_v24 = vor.u32 %v3861_v46, %v3398_v49  ;;  %v3874_v45 = vld [vmem:[%s6046_s3 + $0x204] sm:$0xf0]  ;;  %v3873_v56 = vld [vmem:[%s6046_s3 + $0x204] sm:$0xf] }
 0x1ab   : > { %1830 = vmatpush.bf16.msra.mxu2 %v5454_v5  ;;  %1843 = vmatpush.bf16.msrb.mxu3 %v5456_v59  ;;  %v3462_v46 = vld [vmem:[%s6046_s3 + $0x208] sm:$0xf0] }
 0x1ac   : > { %v1380_v25 = vpack.c.bf16 %v1379_v62, %v1379_v62  ;;  %v3388_v62 = vld [vmem:[%s6046_s3 + $0x190] sm:$0xf] }
 0x1ae   : > { %v1815_v50 = vunpack.c.l.b16 %v1380_v25  ;;  %1502 = vmatmul.bf16.vlgmr.msrb.gmra.mxu0 %v1380_v25  ;;  %1515 = vmatmul.bf16.vlgmr.msra.gmra.mxu1 %v1380_v25 }
 0x1af   : > { %1671 = vmatmul.bf16.vlgmr.msrb.gmra.mxu2 %v1380_v25  ;;  %1684 = vmatmul.bf16.vlgmr.msra.gmra.mxu3 %v1380_v25  ;;  %v3858_v25 = vld [vmem:[%s6046_s3 + $0x184] sm:$0xf0] }
 0x1b0   : > { %1786 = vmatpush.bf16.msrb.mxu0 %v5356_v61  ;;  %1799 = vmatpush.bf16.msra.mxu1 %v5358_v63  ;;  %v5511_v13 = vpack.c.b16 %v1815_v50, %v1815_v50  ;;  %v3428_v61 = vld [vmem:[%s6046_s3 + $0x1e0] sm:$0xf]  ;;  %v3870_v63 = vld [vmem:[%s6046_s3 + $0x1e4] sm:$0xf0]  ;;  %v3518_v50 = vld [vmem:[%s6046_s3 + $0x278] sm:$0xf0]  ;;  %v5677_v52 = vor.u32 %v3858_v25, %v3380_v7 }
 0x1b1   : > { %1831 = vmatpush.bf16.msra.mxu2 %v5473_v43  ;;  %1844 = vmatpush.bf16.msrb.mxu3 %v5475_v47  ;;  %v5537_v18 = vor.u32 %v3870_v63, %v3428_v61  ;;  %v5685_v3 = vor.u32 %v3887_v51, %v3518_v50  ;;  %v3500_v63 = vld [vmem:[%s6046_s3 + $0x250] sm:$0xf] }
 0x1b2   : > { %v1820_v31 = vshll.u32 %v5511_v13, 16  ;;  %v1818_v41 = vshrl.u32 %v5511_v13, 16 }
 0x1b4   : > { %1787 = vmatpush.bf16.msrb.mxu0 %v5378_v9  ;;  %1800 = vmatpush.bf16.msra.mxu1 %v5380_v10  ;;  %v1634_v9 = vrot.slane %v1632_v6, 1  ;;  %v1630_v10 = vshrl.u32 %v5501_v57, 16  ;;  %v1822_v19 = vrot.slane %v1820_v31, 1  ;;  %v3505_v31 = vor.u32 %v3883_v16, %v3502_v4  ;;  %v3894_v4 = vld [vmem:[%s6048_s5 + $0x28] sm:$0xff] }
 0x1b5   : > { %1832 = vmatpush.bf16.msra.mxu2 %v5507_v58  ;;  %1845 = vmatpush.bf16.msrb.mxu3 %v5509_v27 }
 0x1b6   : > { %v1635_v29 = vor.u32 %v1634_v9, %v1630_v10  ;;  %v5561_v28 = vor.u32 %v1822_v19, %v1818_v41  ;;  %v3881_v9 = vld [vmem:[%s6046_s3 + $0x244] sm:$0xf]  ;;  %v3494_v10 = vld [vmem:[%s6046_s3 + $0x248] sm:$0xf0]  ;;  %v3486_v41 = vld [vmem:[%s6046_s3 + $0x238] sm:$0xf0] }
 0x1b7   : > { %v3497_v22 = vor.u32 %v3881_v9, %v3494_v10 }
 0x1b8   : > { %1788 = vmatpush.bf16.msrb.mxu0 %v5396_v33  ;;  %1801 = vmatpush.bf16.msra.mxu1 %v5398_v12  ;;  %v3867_v33 = vld [vmem:[%s6046_s3 + $0x1d4] sm:$0xf]  ;;  %v3422_v12 = vld [vmem:[%s6046_s3 + $0x1d8] sm:$0xf0] }
 0x1b9   : > { %1980 = vmatpush.bf16.msrb.mxu2 %v5513_v8  ;;  %1993 = vmatpush.bf16.msra.mxu3 %v5515_v0  ;;  %v5565_v15 = vor.u32 %v3867_v33, %v3422_v12  ;;  %v3880_v33 = vld [vmem:[%s6046_s3 + $0x234] sm:$0xf0]  ;;  %v3879_v12 = vld [vmem:[%s6046_s3 + $0x234] sm:$0xf] }
 0x1bc   : > { %1789 = vmatpush.bf16.msrb.mxu0 %v5416_v26  ;;  %1802 = vmatpush.bf16.msra.mxu1 %v5420_v32  ;;  %v3865_v26 = vld [vmem:[%s6046_s3 + $0x1c4] sm:$0xf]  ;;  %v3414_v32 = vld [vmem:[%s6046_s3 + $0x1c8] sm:$0xf0] }
 0x1bd   : > { %1981 = vmatpush.bf16.msrb.mxu2 %v5537_v18  ;;  %1994 = vmatpush.bf16.msra.mxu3 %v5539_v34  ;;  %v5587_v20 = vor.u32 %v3865_v26, %v3414_v32  ;;  %v3478_v26 = vld [vmem:[%s6046_s3 + $0x228] sm:$0xf0] }
 0x1be   : > { %1645 = vmatmul.bf16.vlgmr.msra.gmra.mxu0 %v1635_v29  ;;  %1658 = vmatmul.bf16.vlgmr.msrb.gmra.mxu1 %v1635_v29 }
 0x1bf   : > { %1833 = vmatmul.bf16.vlgmr.msra.gmra.mxu2 %v5561_v28  ;;  %1846 = vmatmul.bf16.vlgmr.msrb.gmra.mxu3 %v5561_v28 }
 0x1c0   : > { %1790 = vmatpush.bf16.msrb.mxu0 %v5436_v40  ;;  %1803 = vmatpush.bf16.msra.mxu1 %v5438_v44  ;;  %v5605_v40 = vor.u32 %v3864_v2, %v3404_v54  ;;  %v5607_v44 = vor.u32 %v3863_v55, %v3406_v36  ;;  %v3876_v54 = vld [vmem:[%s6046_s3 + $0x214] sm:$0xf0]  ;;  %v3875_v2 = vld [vmem:[%s6046_s3 + $0x214] sm:$0xf]  ;;  %v3470_v55 = vld [vmem:[%s6046_s3 + $0x218] sm:$0xf0] }
 0x1c1   : > { %1982 = vmatpush.bf16.msrb.mxu2 %v5563_v17  ;;  %1995 = vmatpush.bf16.msra.mxu3 %v5565_v15 }
 0x1c4   : > { %1791 = vmatpush.bf16.msrb.mxu0 %v5454_v5  ;;  %1804 = vmatpush.bf16.msra.mxu1 %v5456_v59  ;;  %v3860_v5 = vld [vmem:[%s6046_s3 + $0x194] sm:$0xf0]  ;;  %v3859_v59 = vld [vmem:[%s6046_s3 + $0x194] sm:$0xf] }
 0x1c5   : > { %1983 = vmatpush.bf16.msrb.mxu2 %v5585_v38  ;;  %1996 = vmatpush.bf16.msra.mxu3 %v5587_v20  ;;  %v5645_v21 = vor.u32 %v3860_v5, %v3388_v62  ;;  %v5647_v30 = vor.u32 %v3859_v59, %v3390_v11 }
 0x1c8   : > { %1792 = vmatpush.bf16.msrb.mxu0 %v5473_v43  ;;  %1805 = vmatpush.bf16.msra.mxu1 %v5475_v47  ;;  %v3382_v43 = vld [vmem:[%s6046_s3 + $0x188] sm:$0xf0]  ;;  %v3516_v47 = vld [vmem:[%s6046_s3 + $0x270] sm:$0xf] }
 0x1c9   : > { %1984 = vmatpush.bf16.msrb.mxu2 %v5605_v40  ;;  %1997 = vmatpush.bf16.msra.mxu3 %v5607_v44  ;;  %v5679_v53 = vor.u32 %v3857_v35, %v3382_v43  ;;  %v5683_v1 = vor.u32 %v3888_v39, %v3516_v47 }
 0x1cc   : > { %1793 = vmatpush.bf16.msrb.mxu0 %v5507_v58  ;;  %1806 = vmatpush.bf16.msra.mxu1 %v5509_v27  ;;  %v3885_v58 = vld [vmem:[%s6046_s3 + $0x264] sm:$0xf]  ;;  %v3510_v27 = vld [vmem:[%s6046_s3 + $0x268] sm:$0xf0] }
 0x1cd   : > { %1985 = vmatpush.bf16.msrb.mxu2 %v5625_v14  ;;  %1998 = vmatpush.bf16.msra.mxu3 %v5627_v24  ;;  %v5710_v61 = vor.u32 %v3885_v58, %v3510_v27 }
 0x1cf   : > { %1794 = vmatmul.bf16.vlgmr.msrb.gmra.mxu0 %v1635_v29  ;;  %1807 = vmatmul.bf16.vlgmr.msra.gmra.mxu1 %v1635_v29  ;;  %v3485_v29 = vor.u32 %v3880_v33, %v3484_v23  ;;  %v3911_v23 = vld [vmem:[%s6048_s5 + $0xb0] sm:$0xff] }
 0x1d0   : > { %1950 = vmatpush.bf16.msra.mxu0 %v5513_v8  ;;  %1963 = vmatpush.bf16.msrb.mxu1 %v5515_v0  ;;  %v5704_v8 = vrot.slane %v5501_v57, 1  ;;  %v5708_v0 = vor.u32 %v3886_v60, %v3508_v48  ;;  %v3884_v57 = vld [vmem:[%s6046_s3 + $0x254] sm:$0xf0]  ;;  %v3919_v33 = vld [vmem:[%s6048_s5 + $0xf0] sm:$0xff] }
 0x1d1   : > { %1986 = vmatpush.bf16.msrb.mxu2 %v5645_v21  ;;  %1999 = vmatpush.bf16.msra.mxu3 %v5647_v30  ;;  %v3501_v6 = vor.u32 %v3884_v57, %v3500_v63  ;;  %v3895_v63 = vld [vmem:[%s6048_s5 + $0x30] sm:$0xff] }
 0x1d4   : > { %1951 = vmatpush.bf16.msra.mxu0 %v5537_v18  ;;  %1964 = vmatpush.bf16.msrb.mxu1 %v5539_v34  ;;  %v3492_v18 = vld [vmem:[%s6046_s3 + $0x240] sm:$0xf]  ;;  %v3882_v34 = vld [vmem:[%s6046_s3 + $0x244] sm:$0xf0] }
 0x1d5   : > { %1987 = vmatpush.bf16.msrb.mxu2 %v5677_v52  ;;  %2000 = vmatpush.bf16.msra.mxu3 %v5679_v53  ;;  %v3493_v19 = vor.u32 %v3882_v34, %v3492_v18  ;;  %v3912_v18 = vld [vmem:[%s6048_s5 + $0xb8] sm:$0xff] }
 0x1d6   : > { %v3920_v34 = vld [vmem:[%s6048_s5 + $0xf8] sm:$0xff] }
 0x1d8   : > { %1952 = vmatpush.bf16.msra.mxu0 %v5563_v17  ;;  %1965 = vmatpush.bf16.msrb.mxu1 %v5565_v15  ;;  %v3489_v17 = vor.u32 %v3879_v12, %v3486_v41  ;;  %v3476_v15 = vld [vmem:[%s6046_s3 + $0x220] sm:$0xf] }
 0x1d9   : > { %2135 = vmatpush.bf16.msra.mxu2 %v5683_v1  ;;  %2148 = vmatpush.bf16.msrb.mxu3 %v5685_v3  ;;  %v3477_v32 = vor.u32 %v3878_v37, %v3476_v15  ;;  %v3910_v15 = vld [vmem:[%s6048_s5 + $0xa8] sm:$0xff] }
 0x1da   : > { %1988 = vmatmul.bf16.vlgmr.msrb.gmra.mxu2 %v5704_v8  ;;  %2001 = vmatmul.bf16.vlgmr.msra.gmra.mxu3 %v5704_v8  ;;  %v3918_v37 = vld [vmem:[%s6048_s5 + $0xe8] sm:$0xff] }
 0x1dc   : > { %1953 = vmatpush.bf16.msra.mxu0 %v5585_v38  ;;  %1966 = vmatpush.bf16.msrb.mxu1 %v5587_v20  ;;  %v3481_v38 = vor.u32 %v3877_v42, %v3478_v26  ;;  %v3468_v20 = vld [vmem:[%s6046_s3 + $0x210] sm:$0xf]  ;;  %v3890_v42 = vld [vmem:[%s6048_s5 + $0x8] sm:$0xff]  ;;  %v3901_v26 = vld [vmem:[%s6048_s5 + $0x60] sm:$0xff] }
 0x1dd   : > { %2136 = vmatpush.bf16.msra.mxu2 %v5708_v0  ;;  %2149 = vmatpush.bf16.msrb.mxu3 %v5710_v61  ;;  %v3469_v36 = vor.u32 %v3876_v54, %v3468_v20  ;;  %v3889_v20 = vld [vmem:[%s6048_s5] sm:$0xff]  ;;  %v3928_v54 = vld [vmem:[%s6048_s5 + $0x138] sm:$0xff] }
 0x1e0   : > { %1954 = vmatpush.bf16.msra.mxu0 %v5605_v40  ;;  %1967 = vmatpush.bf16.msrb.mxu1 %v5607_v44  ;;  %v3473_v40 = vor.u32 %v3875_v2, %v3470_v55  ;;  %v3460_v44 = vld [vmem:[%s6046_s3 + $0x200] sm:$0xf] }
 0x1e1   : > { %2137 = vmatpush.bf16.msra.mxu2 %v3501_v6  ;;  %2150 = vmatpush.bf16.msrb.mxu3 %v3505_v31  ;;  %v3461_v49 = vor.u32 %v3874_v45, %v3460_v44  ;;  %v3916_v44 = vld [vmem:[%s6048_s5 + $0xd8] sm:$0xff]  ;;  %v3927_v45 = vld [vmem:[%s6048_s5 + $0x130] sm:$0xff] }
 0x1e4   : > { %1955 = vmatpush.bf16.msra.mxu0 %v5625_v14  ;;  %1968 = vmatpush.bf16.msrb.mxu1 %v5627_v24  ;;  %v3465_v14 = vor.u32 %v3873_v56, %v3462_v46  ;;  %v2133_v24 = vrot.slane %v5511_v13, 1 }
 0x1e5   : > { %2138 = vmatpush.bf16.msra.mxu2 %v3493_v19  ;;  %2151 = vmatpush.bf16.msrb.mxu3 %v3497_v22 }
 0x1e8   : > { %1956 = vmatpush.bf16.msra.mxu0 %v5645_v21  ;;  %1969 = vmatpush.bf16.msrb.mxu1 %v5647_v30 }
 0x1e9   : > { %2139 = vmatpush.bf16.msra.mxu2 %v3485_v29  ;;  %2152 = vmatpush.bf16.msrb.mxu3 %v3489_v17 }
 0x1ec   : > { %1957 = vmatpush.bf16.msra.mxu0 %v5677_v52  ;;  %1970 = vmatpush.bf16.msrb.mxu1 %v5679_v53 }
 0x1ed   : > { %2140 = vmatpush.bf16.msra.mxu2 %v3477_v32  ;;  %2153 = vmatpush.bf16.msrb.mxu3 %v3481_v38 }
 0x1ef   : > { %1958 = vmatmul.bf16.vlgmr.msra.gmra.mxu0 %v5561_v28  ;;  %1971 = vmatmul.bf16.vlgmr.msrb.gmra.mxu1 %v5561_v28 }
 0x1f0   : > { %2105 = vmatpush.bf16.msrb.mxu0 %v5683_v1  ;;  %2118 = vmatpush.bf16.msra.mxu1 %v5685_v3 }
 0x1f1   : > { %2141 = vmatpush.bf16.msra.mxu2 %v3469_v36  ;;  %2154 = vmatpush.bf16.msrb.mxu3 %v3473_v40 }
 0x1f4   : > { %2106 = vmatpush.bf16.msrb.mxu0 %v5708_v0  ;;  %2119 = vmatpush.bf16.msra.mxu1 %v5710_v61 }
 0x1f5   : > { %2142 = vmatpush.bf16.msra.mxu2 %v3461_v49  ;;  %2155 = vmatpush.bf16.msrb.mxu3 %v3465_v14 }
 0x1f8   : > { %2107 = vmatpush.bf16.msrb.mxu0 %v3501_v6  ;;  %2120 = vmatpush.bf16.msra.mxu1 %v3505_v31  ;;  %v3893_v6 = vld [vmem:[%s6048_s5 + $0x20] sm:$0xff]  ;;  %v3904_v31 = vld [vmem:[%s6048_s5 + $0x78] sm:$0xff] }
 0x1f9   : > { %2143 = vmatmul.bf16.vlgmr.msra.gmra.mxu2 %v2133_v24  ;;  %2156 = vmatmul.bf16.vlgmr.msrb.gmra.mxu3 %v2133_v24  ;;  %v3915_v24 = vld [vmem:[%s6048_s5 + $0xd0] sm:$0xff] }
 0x1fa   : > { %2533 = vmatpush.bf16.msrb.mxu2 %v3912_v18  ;;  %2546 = vmatpush.bf16.msra.mxu3 %v3920_v34 }
 0x1fc   : > { %2108 = vmatpush.bf16.msrb.mxu0 %v3493_v19  ;;  %2121 = vmatpush.bf16.msra.mxu1 %v3497_v22  ;;  %v3892_v19 = vld [vmem:[%s6048_s5 + $0x18] sm:$0xff]  ;;  %v3903_v22 = vld [vmem:[%s6048_s5 + $0x70] sm:$0xff] }
 0x1fe   : > { %2534 = vmatpush.bf16.msrb.mxu2 %v3911_v23  ;;  %2547 = vmatpush.bf16.msra.mxu3 %v3919_v33 }
 0x200   : > { %2109 = vmatpush.bf16.msrb.mxu0 %v3485_v29  ;;  %2122 = vmatpush.bf16.msra.mxu1 %v3489_v17  ;;  %v3891_v29 = vld [vmem:[%s6048_s5 + $0x10] sm:$0xff]  ;;  %v3902_v17 = vld [vmem:[%s6048_s5 + $0x68] sm:$0xff] }
 0x202   : > { %2535 = vmatpush.bf16.msrb.mxu2 %v3910_v15  ;;  %2548 = vmatpush.bf16.msra.mxu3 %v3918_v37 }
 0x204   : > { %2110 = vmatpush.bf16.msrb.mxu0 %v3477_v32  ;;  %2123 = vmatpush.bf16.msra.mxu1 %v3481_v38  ;;  %v3909_v32 = vld [vmem:[%s6048_s5 + $0xa0] sm:$0xff] }
 0x205   : > { %v3917_v38 = vld [vmem:[%s6048_s5 + $0xe0] sm:$0xff] }
 0x206   : > { %2536 = vmatpush.bf16.msrb.mxu2 %v3909_v32  ;;  %2549 = vmatpush.bf16.msra.mxu3 %v3917_v38  ;;  %v3934_v32 = vld [vmem:[%s6050_s7 + $0x28] sm:$0xff]  ;;  %v3933_v38 = vld [vmem:[%s6050_s7 + $0x20] sm:$0xff] }
 0x208   : > { %2111 = vmatpush.bf16.msrb.mxu0 %v3469_v36  ;;  %2124 = vmatpush.bf16.msra.mxu1 %v3473_v40  ;;  %v3900_v36 = vld [vmem:[%s6048_s5 + $0x58] sm:$0xff] }
 0x209   : > { %v3908_v40 = vld [vmem:[%s6048_s5 + $0x98] sm:$0xff] }
 0x20a   : > { %2537 = vmatpush.bf16.msrb.mxu2 %v3908_v40  ;;  %2550 = vmatpush.bf16.msra.mxu3 %v3916_v44  ;;  %v3943_v40 = vld [vmem:[%s6052_s9 + $0x30] sm:$0xff]  ;;  %v3942_v44 = vld [vmem:[%s6052_s9 + $0x28] sm:$0xff] }
 0x20c   : > { %2112 = vmatpush.bf16.msrb.mxu0 %v3461_v49  ;;  %2125 = vmatpush.bf16.msra.mxu1 %v3465_v14  ;;  %v3899_v49 = vld [vmem:[%s6048_s5 + $0x50] sm:$0xff] }
 0x20d   : > { %v3907_v14 = vld [vmem:[%s6048_s5 + $0x90] sm:$0xff] }
 0x20e   : > { %2538 = vmatpush.bf16.msrb.mxu2 %v3907_v14  ;;  %2551 = vmatpush.bf16.msra.mxu3 %v3915_v24  ;;  %v3940_v24 = vld [vmem:[%s6052_s9 + $0x18] sm:$0xff] }
 0x20f   : > { %2113 = vmatmul.bf16.vlgmr.msrb.gmra.mxu0 %v5704_v8  ;;  %2126 = vmatmul.bf16.vlgmr.msra.gmra.mxu1 %v5704_v8  ;;  %v3896_v8 = vld [vmem:[%s6048_s5 + $0x38] sm:$0xff] }
 0x210   : > { %2507 = vmatpush.bf16.msra.mxu0 %v3896_v8  ;;  %2520 = vmatpush.bf16.msrb.mxu1 %v3904_v31  ;;  %v3935_v31 = vld [vmem:[%s6050_s7 + $0x30] sm:$0xff] }
 0x214   : > { %2508 = vmatpush.bf16.msra.mxu0 %v3895_v63  ;;  %2521 = vmatpush.bf16.msrb.mxu1 %v3903_v22  ;;  %v3936_v63 = vld [vmem:[%s6050_s7 + $0x38] sm:$0xff] }
 0x218   : > { %2509 = vmatpush.bf16.msra.mxu0 %v3894_v4  ;;  %2522 = vmatpush.bf16.msrb.mxu1 %v3902_v17 }
 0x219   : > { %v1609_v28 = vpop.f32.mrf.mxu2  ;;  %v1622_v62 = vpop.f32.mrf.mxu3 }
 0x21c   : > { %2510 = vmatpush.bf16.msra.mxu0 %v3893_v6  ;;  %2523 = vmatpush.bf16.msrb.mxu1 %v3901_v26 }
 0x220   : > { %2511 = vmatpush.bf16.msra.mxu0 %v3892_v19  ;;  %2524 = vmatpush.bf16.msrb.mxu1 %v3900_v36  ;;  %v3944_v36 = vld [vmem:[%s6052_s9 + $0x38] sm:$0xff] }
 0x221   : > { %v1611_v5 = vpop.f32.mrf.mxu2  ;;  %v1624_v13 = vpop.f32.mrf.mxu3 }
 0x222   : > { %v3906_v5 = vld [vmem:[%s6048_s5 + $0x88] sm:$0xff] }
 0x223   : > { %v3914_v13 = vld [vmem:[%s6048_s5 + $0xc8] sm:$0xff]  ;;  %2539 = vmatpush.bf16.msrb.mxu2 %v3906_v5 }
 0x224   : > { %2512 = vmatpush.bf16.msra.mxu0 %v3891_v29  ;;  %2525 = vmatpush.bf16.msrb.mxu1 %v3899_v49  ;;  %v3941_v49 = vld [vmem:[%s6052_s9 + $0x20] sm:$0xff] }
 0x225   : > { %2552 = vmatpush.bf16.msra.mxu3 %v3914_v13 }
 0x228   : > { %2513 = vmatpush.bf16.msra.mxu0 %v3890_v42 }
 0x22b   : > { %v1503_v59 = vpop.f32.mrf.mxu0  ;;  %v1516_v11 = vpop.f32.mrf.mxu1 }
 0x22c   : > { %v5807_v21 = vadd.f32 %v1609_v28, %v1503_v59  ;;  %v5809_v30 = vadd.f32 %v1622_v62, %v1516_v11  ;;  %2514 = vmatpush.bf16.msra.mxu0 %v3889_v20  ;;  %v3926_v28 = vld [vmem:[%s6048_s5 + $0x128] sm:$0xff]  ;;  %v3925_v59 = vld [vmem:[%s6048_s5 + $0x120] sm:$0xff]  ;;  %v3932_v20 = vld [vmem:[%s6050_s7 + $0x18] sm:$0xff] }
 0x22d   : > { %v3898_v62 = vld [vmem:[%s6048_s5 + $0x48] sm:$0xff]  ;;  %v3897_v11 = vld [vmem:[%s6048_s5 + $0x40] sm:$0xff] }
 0x22e   : > { %2526 = vmatpush.bf16.msrb.mxu1 %v3898_v62 }
 0x230   : > { %2559 = vmatpush.bf16.msrb.mxu0 %v3928_v54  ;;  %v3931_v54 = vld [vmem:[%s6050_s7 + $0x10] sm:$0xff] }
 0x232   : > { %v1672_v7 = vpop.f32.mrf.mxu2  ;;  %v1685_v25 = vpop.f32.mrf.mxu3  ;;  %2527 = vmatpush.bf16.msrb.mxu1 %v3897_v11  ;;  %v3939_v11 = vld [vmem:[%s6052_s9 + $0x10] sm:$0xff] }
 0x233   : > { %v1505_v35 = vpop.f32.mrf.mxu0  ;;  %v1518_v43 = vpop.f32.mrf.mxu1 }
 0x234   : > { %2560 = vmatpush.bf16.msrb.mxu0 %v3927_v45 }
 0x236   : > { %2639 = vmatpush.bf16.msra.mxu1 %v3936_v63 }
 0x238   : > { %2561 = vmatpush.bf16.msrb.mxu0 %v3926_v28 }
 0x23a   : > { %v1674_v47 = vpop.f32.mrf.mxu2  ;;  %v1687_v39 = vpop.f32.mrf.mxu3  ;;  %2640 = vmatpush.bf16.msra.mxu1 %v3935_v31 }
 0x23b   : > { %v1646_v51 = vpop.f32.mrf.mxu0  ;;  %v1659_v50 = vpop.f32.mrf.mxu1  ;;  %v3924_v47 = vld [vmem:[%s6048_s5 + $0x118] sm:$0xff] }
 0x23c   : > { %v1673_v52 = vadd.f32 %v1672_v7, %v1646_v51  ;;  %v1686_v53 = vadd.f32 %v1685_v25, %v1659_v50  ;;  %v3905_v7 = vld [vmem:[%s6048_s5 + $0x80] sm:$0xff]  ;;  %2562 = vmatpush.bf16.msrb.mxu0 %v3925_v59  ;;  %v3923_v50 = vld [vmem:[%s6048_s5 + $0x110] sm:$0xff] }
 0x23d   : > { %v3913_v25 = vld [vmem:[%s6048_s5 + $0xc0] sm:$0xff]  ;;  %2540 = vmatpush.bf16.msrb.mxu2 %v3905_v7 }
 0x23e   : > { %2553 = vmatpush.bf16.msra.mxu3 %v3913_v25  ;;  %2641 = vmatpush.bf16.msra.mxu1 %v3934_v32 }
 0x240   : > { %2563 = vmatpush.bf16.msrb.mxu0 %v3924_v47 }
 0x241   : > { %2719 = vmatpush.bf16.msra.mxu2 %v3944_v36 }
 0x242   : > { %v1834_v1 = vpop.f32.mrf.mxu2  ;;  %v1847_v3 = vpop.f32.mrf.mxu3  ;;  %2642 = vmatpush.bf16.msra.mxu1 %v3933_v38 }
 0x243   : > { %v5811_v48 = vadd.f32 %v1834_v1, %v1673_v52  ;;  %v5813_v60 = vadd.f32 %v1847_v3, %v1686_v53  ;;  %v1648_v58 = vpop.f32.mrf.mxu0  ;;  %v1661_v27 = vpop.f32.mrf.mxu1 }
 0x244   : > { %2564 = vmatpush.bf16.msrb.mxu0 %v3923_v50  ;;  %v3922_v58 = vld [vmem:[%s6048_s5 + $0x108] sm:$0xff] }
 0x245   : > { %2720 = vmatpush.bf16.msra.mxu2 %v3943_v40 }
 0x246   : > { %2643 = vmatpush.bf16.msra.mxu1 %v3932_v20 }
 0x248   : > { %2565 = vmatpush.bf16.msrb.mxu0 %v3922_v58 }
 0x249   : > { %2721 = vmatpush.bf16.msra.mxu2 %v3942_v44 }
 0x24a   : > { %v1836_v0 = vpop.f32.mrf.mxu2  ;;  %v1849_v61 = vpop.f32.mrf.mxu3  ;;  %2644 = vmatpush.bf16.msra.mxu1 %v3931_v54 }
 0x24c   : > { %v5821_v57 = vpop.f32.mrf.mxu0  ;;  %v5823_v16 = vpop.f32.mrf.mxu1 }
 0x24d   : > { %v1812_v0 = vadd.f32 %v5821_v57, %v5807_v21  ;;  %v1813_v61 = vadd.f32 %v5823_v16, %v5809_v30  ;;  %v3985_v21 = vld [vmem:[%s6047_s4] ss:$0 sm:$0xff]  ;;  %2722 = vmatpush.bf16.msra.mxu2 %v3941_v49 }
 0x251   : > { %2723 = vmatpush.bf16.msra.mxu2 %v3940_v24 }
 0x254   : > { %v1797_v9 = vpop.f32.mrf.mxu0  ;;  %v1810_v10 = vpop.f32.mrf.mxu1 }
 0x255   : > { %2724 = vmatpush.bf16.msra.mxu2 %v3939_v11 }
 0x25d   : > { %v5852_v12 = vpop.f32.mrf.mxu2  ;;  %v5854_v41 = vpop.f32.mrf.mxu3 }
 0x25e   : > { %v2006_v39 = vadd.f32 %v5852_v12, %v5811_v48  ;;  %v2007_v51 = vadd.f32 %v5854_v41, %v5813_v60  ;;  %v3921_v48 = vld [vmem:[%s6048_s5 + $0x100] sm:$0xff] }
 0x25f   : > { %2566 = vmatpush.bf16.msrb.mxu0 %v3921_v48 }
 0x265   : > { %v1991_v2 = vpop.f32.mrf.mxu2  ;;  %v2004_v55 = vpop.f32.mrf.mxu3 }
 0x266   : > { %v3930_v2 = vld [vmem:[%s6050_s7 + $0x8] sm:$0xff]  ;;  %v3929_v55 = vld [vmem:[%s6050_s7] sm:$0xff] }
 0x267   : > { %2645 = vmatpush.bf16.msra.mxu1 %v3930_v2 }
 0x26b   : > { %2646 = vmatpush.bf16.msra.mxu1 %v3929_v55 }
 0x26c   : > { %v1959_v56 = vpop.f32.mrf.mxu0  ;;  %v1972_v46 = vpop.f32.mrf.mxu1 }
 0x26d   : > { %v1976_v4 = vadd.f32 %v1959_v56, %v1812_v0  ;;  %v1977_v6 = vadd.f32 %v1972_v46, %v1813_v61  ;;  %v2266_v56 = vld [vmem:[%s6049_s6] sm:$0x1] }
 0x26e   : > { %v2670_v0 = vld [vmem:[%s6053_s10] sm:$0x1] }
 0x274   : > { %v1961_v35 = vpop.f32.mrf.mxu0  ;;  %v1974_v43 = vpop.f32.mrf.mxu1 }
 0x27c   : > { %v2144_v52 = vpop.f32.mrf.mxu2  ;;  %v2157_v53 = vpop.f32.mrf.mxu3 }
 0x27d   : > { %v2161_v1 = vadd.f32 %v2144_v52, %v2006_v39  ;;  %v2162_v3 = vadd.f32 %v2157_v53, %v2007_v51  ;;  %v3938_v53 = vld [vmem:[%s6052_s9 + $0x8] sm:$0xff] }
 0x27e   : > { %2725 = vmatpush.bf16.msra.mxu2 %v3938_v53 }
 0x27f   : > { %v2164_v27 = vmax.f32 %v2161_v1, %v2162_v3  ;;  %v3937_v1 = vld [vmem:[%s6052_s9] sm:$0xff] }
 0x280   : > { %v2590_v3 = vld [vmem:[%s6051_s8] sm:$0x1] }
 0x282   : > { %2726 = vmatpush.bf16.msra.mxu2 %v3937_v1 }
 0x284   : > { %v2146_v60 = vpop.f32.mrf.mxu2  ;;  %v2159_v8 = vpop.f32.mrf.mxu3 }
 0x28c   : > { %v2114_v18 = vpop.f32.mrf.mxu0  ;;  %v2127_v34 = vpop.f32.mrf.mxu1 }
 0x28d   : > { %v2131_v9 = vadd.f32 %v2114_v18, %v1976_v4  ;;  %v2132_v10 = vadd.f32 %v2127_v34, %v1977_v6 }
 0x28f   : > { %v2163_v19 = vmax.f32 %v2131_v9, %v2132_v10 }
 0x291   : > { %v2165_v30 = vmax.f32 %v2163_v19, %v2164_v27 }
 0x293   : > { %v2170_v57 = vadd.f32 %v3985_v21, %v2165_v30 }
 0x294   : > { %v2116_v16 = vpop.f32.mrf.mxu0  ;;  %v2129_v22 = vpop.f32.mrf.mxu1 }
 0x295   : > { %v2171_v23 = vmax.f32 %v2170_v57, 0.0 }
 0x297   : > { %v2181_v33 = vpack.c.bf16 %v2171_v23, %v2171_v23  ;;  %v2173_v12 = vrot.slane %v2171_v23, 1  ;;  %v2175_v41 = vrot.slane %v2171_v23, 2  ;;  %v2177_v29 = vrot.slane %v2171_v23, 3 }
 0x298   : > { %v2179_v42 = vrot.slane %v2171_v23, 4 }
 0x299   : > { %2515 = vmatmul.bf16.vlgmr.msra.gmra.mxu0 %v2181_v33  ;;  %v2182_v17 = vpack.c.bf16 %v2173_v12, %v2173_v12  ;;  %v2183_v15 = vpack.c.bf16 %v2175_v41, %v2175_v41  ;;  %v2184_v37 = vpack.c.bf16 %v2177_v29, %v2177_v29 }
 0x29a   : > { %v2185_v26 = vpack.c.bf16 %v2179_v42, %v2179_v42 }
 0x29b   : > { %2528 = vmatmul.bf16.vlgmr.msrb.gmra.mxu1 %v2182_v17  ;;  %2541 = vmatmul.bf16.vlgmr.msrb.gmra.mxu2 %v2183_v15 }
 0x29c   : > { %2554 = vmatmul.bf16.vlgmr.msra.gmra.mxu3 %v2184_v37 }
 0x2a9   : > { %2567 = vmatmul.bf16.vlgmr.msrb.gmra.mxu0 %v2185_v26 }
 0x316   : > { %v2516_v45 = vpop.f32.mrf.mxu0 }
 0x317   : > { %v2517_v14 = vadd.f32 %v2516_v45, %v2266_v56 }
 0x318   : > { %v2529_v46 = vpop.f32.mrf.mxu1 }
 0x319   : > { %v2530_v5 = vadd.f32 %v2529_v46, %v2517_v14 }
 0x31e   : > { %v2518_v28 = vpop.f32.mrf.mxu0  ;;  %v2542_v62 = vpop.f32.mrf.mxu2 }
 0x31f   : > { %v2555_v13 = vpop.f32.mrf.mxu3  ;;  %v2543_v7 = vadd.f32 %v2542_v62, %v2530_v5 }
 0x320   : > { %v2531_v59 = vpop.f32.mrf.mxu1 }
 0x321   : > { %v2556_v25 = vadd.f32 %v2555_v13, %v2543_v7 }
 0x326   : > { %v2544_v35 = vpop.f32.mrf.mxu2  ;;  %v2568_v43 = vpop.f32.mrf.mxu0 }
 0x327   : > { %v2557_v47 = vpop.f32.mrf.mxu3  ;;  %v2569_v39 = vadd.f32 %v2568_v43, %v2556_v25 }
 0x329   : > { %v2572_v51 = vmax.f32 %v2569_v39, 0.0 }
 0x32b   : > { %v2573_v50 = vpack.c.bf16 %v2572_v51, %v2572_v51 }
 0x32d   : > { %2647 = vmatmul.bf16.vlgmr.msra.gmra.mxu1 %v2573_v50 }
 0x32e   : > { %v2570_v52 = vpop.f32.mrf.mxu0 }
 0x3aa   : > { %v2648_v58 = vpop.f32.mrf.mxu1 }
 0x3ab   : > { %v2649_v27 = vadd.f32 %v2648_v58, %v2590_v3 }
 0x3ad   : > { %v2652_v48 = vmax.f32 %v2649_v27, 0.0 }
 0x3af   : > { %v2653_v60 = vpack.c.bf16 %v2652_v48, %v2652_v48 }
 0x3b1   : > { %2727 = vmatmul.bf16.vlgmr.msra.gmra.mxu2 %v2653_v60 }
 0x3b2   : > { %v2650_v8 = vpop.f32.mrf.mxu1 }
 0x434   : > { %v2728_v61 = vpop.f32.mrf.mxu2 }
 0x435   : > { %v2729_v63 = vadd.f32 %v2728_v61, %v2670_v0 }
 0x437   : > { %2732 = vst [vmem:[%s378_s25] sm:$0x1] %v2729_v63 }
 0x438   : > { %4013 = shalt.err (!%p4010_p3)
}
 0x439   : > { %3945 = dma.vmem_to_hbm [thread:$0]  (%p4148_p5), %s2745_s30, 16, %s2747_s12, %s2734_s13  }
 0x43c   : > { %v2730_v4 = vpop.f32.mrf.mxu2 }
 0x43d PF: > { %p3951_p4 = scmp.ge.s32.totalorder %s4048_s20, 2  ;;  %s2758_s19 = sand.u32 1, %s4036_s17  }
 0x43e   : > { %s2759_s22 = scalar_lea.sflag [#allocation3], %s2758_s19 }
 0x43f   : > { %p3948_p7 = pnand %p3951_p4, %p4152_p6 }
 0x441   : > { %p3949_p8 = pneg %p3948_p7 }
 0x443   : > { %4031 = dma.done.wait (%p3949_p8), %s2759_s22, 16  }
 0x444   : > { %4033 = vsyncadd (%p3949_p8), %s2759_s22, 4294967280  ;;  %s6060_s25 = sld [smem:[#allocation5_spill]]  ;;  %p21_p9 = scmp.ge.s32.totalorder %s4135_s23, 4  }
 0x445   : > { %s6061_s19 = sld [smem:[#allocation6_spill]]  ;;  %s6062_s17 = smov %s4040_s18 }
 0x446   : > { %s6064_s20 = smov %s4135_s23  ;;  %23 = sbr.rel (!%p21_p9) target bundleno = 3 (0x3), region = 110 }
 0x44a   : > { %s6063_s18 = smov %s6060_s25 }
 0x44b   :  { %2764 = vsyncpa [#allocation3], 1 }
 0x44c   :  { %2766 = vsyncpa [#allocation3 + $0x1], 1 }

</bundles_post_ra>
